<compile_context>
chip_gen: v7x
topology: tpu7x:2x2x1
jax: 0.10.0
libtpu: 0.0.40
codegen_flags: <defaults>
</compile_context>

<pallas_src>
import functools

import jax
import jax.numpy as jnp
from jax.experimental import pallas as pl
from jax.experimental.pallas import tpu as pltpu


# ---------------------------------------------------------------------------
# Fused whole-network Pallas kernel (one batch sample per grid step)
# ---------------------------------------------------------------------------
def _fused_tcn_ae_kernel(*refs, layer_cfgs, n_weights, n_enc_layers, T, PAD, K):
    """refs layout (positional):
         refs[0]                 x_ref      (Cin0, T)
         refs[1 : 1+n_weights]   weight refs (pre-stacked layout)
         refs[1+n_weights]       recon_ref  (out_ch, T)
         refs[2+n_weights]       encode_ref (enc_ch, T)
         refs[3+n_weights]       slab_a     (Cmax, PAD+T)  VMEM scratch
         refs[4+n_weights]       slab_b     (Cmax, PAD+T)  VMEM scratch

    Activations live entirely in the VMEM slabs.  The first PAD columns of each
    slab are zero; a dilated causal conv with dilation d reads K shifted windows
    starting at column PAD - (K-1)*d + k*d, so the zero halo supplies the causal
    left padding without any jnp.pad / HBM copy.
    """
    x_ref = refs[0]
    w_refs = refs[1:1 + n_weights]
    recon_ref = refs[1 + n_weights]
    encode_ref = refs[2 + n_weights]
    slab_a = refs[3 + n_weights]
    slab_b = refs[4 + n_weights]

    # Zero both slabs once per grid step; activation writes never touch the
    # halo columns, so they stay zero for every layer.
    slab_a[...] = jnp.zeros_like(slab_a)
    slab_b[...] = jnp.zeros_like(slab_b)

    # Load this sample's input activation into slab_a's data region.
    cin0 = layer_cfgs[0][0]
    slab_a[0:cin0, PAD:PAD + T] = x_ref[...].astype(jnp.float32)

    def conv(src_slab, cin, cout, dil, w_ref, b_ref):
        # Dilated causal conv as ONE stacked matmul:
        #   stacked (K*cin, T) from K shifted views of the halo'd slab,
        #   weights pre-stacked as (cout, K*cin).
        base = PAD - (K - 1) * dil
        taps = [src_slab[0:cin, base + k * dil: base + k * dil + T]
                for k in range(K)]
        stacked = jnp.concatenate(taps, axis=0)                  # (K*cin, T)
        return jnp.dot(w_ref[...], stacked,
                       preferred_element_type=jnp.float32) + b_ref[...]

    n_layers = len(layer_cfgs)
    wi = 0
    out = None
    for li, (cin, cout, dil, has_down) in enumerate(layer_cfgs):
        w1, b1, w2, b2 = (w_refs[wi], w_refs[wi + 1],
                          w_refs[wi + 2], w_refs[wi + 3])
        wi += 4
        if has_down:
            wd, bd = w_refs[wi], w_refs[wi + 1]
            wi += 2

        # conv1 -> chomp -> ReLU   (dropout: identity in eval mode)
        h1 = jnp.maximum(conv(slab_a, cin, cout, dil, w1, b1), 0.0)
        slab_b[0:cout, PAD:PAD + T] = h1

        # conv2 -> chomp -> ReLU
        h2 = jnp.maximum(conv(slab_b, cout, cout, dil, w2, b2), 0.0)

        # residual path: identity or fused 1x1 conv on the block input
        x_in = slab_a[0:cin, PAD:PAD + T]
        if has_down:
            res = jnp.dot(wd[...], x_in,
                          preferred_element_type=jnp.float32) + bd[...]
        else:
            res = x_in
        out = jnp.maximum(h2 + res, 0.0)

        if li == n_enc_layers - 1:          # encoder output
            encode_ref[...] = out.astype(encode_ref.dtype)
        if li + 1 < n_layers:               # feed next block (skip final store)
            slab_a[0:cout, PAD:PAD + T] = out

    recon_ref[...] = out.astype(recon_ref.dtype)


# ---------------------------------------------------------------------------
# One-time parameter preparation (weight stacking done OUTSIDE the call path)
# ---------------------------------------------------------------------------
def prepare_params(enc_params, dec_params, kernel_size):
    cfgs, flat = [], []

    def add_stack(params):
        for i, p in enumerate(params):
            cout, cin, K = p["w1"].shape
            has_down = p["wd"] is not None
            cfgs.append((int(cin), int(cout), int(2 ** i), bool(has_down)))
            # (Cout, Cin, K) -> (Cout, K*Cin) so that column k*Cin+ci == w[:, ci, k]
            flat.append(jnp.transpose(p["w1"], (0, 2, 1)).reshape(cout, K * cin))
            flat.append(p["b1"].reshape(cout, 1))
            flat.append(jnp.transpose(p["w2"], (0, 2, 1)).reshape(cout, K * cout))
            flat.append(p["b2"].reshape(cout, 1))
            if has_down:
                flat.append(p["wd"].reshape(cout, cin))
                flat.append(p["bd"].reshape(cout, 1))

    add_stack(enc_params)
    n_enc = len(enc_params)
    add_stack(dec_params)
    return {
        "cfgs": tuple(cfgs),
        "flat": flat,
        "K": int(kernel_size),
        "n_enc": n_enc,
        "enc_ch": int(enc_params[-1]["w1"].shape[0]),
        "out_ch": int(dec_params[-1]["w1"].shape[0]),
    }


# ---------------------------------------------------------------------------
# Forward wrapper (single fused pallas_call)
# ---------------------------------------------------------------------------
def fused_autoencoder_forward(x_btc, prepared):
    """x_btc: (B, T, C_in) -> (recon (B, T, out_ch), encode (B, T, enc_ch))."""
    cfgs = prepared["cfgs"]
    flat = prepared["flat"]
    K = prepared["K"]
    n_enc = prepared["n_enc"]
    enc_ch = prepared["enc_ch"]
    out_ch = prepared["out_ch"]

    x = jnp.transpose(x_btc, (0, 2, 1))        # (B, C, T), matches x.transpose(1, 2)
    B, cin0, T = x.shape

    max_halo = max((K - 1) * dil for (_, _, dil, _) in cfgs)
    PAD = 128 * max(1, -(-max_halo // 128))    # lane-aligned data region start
    cmax = max(max(ci, co) for (ci, co, _, _) in cfgs)

    kern = functools.partial(
        _fused_tcn_ae_kernel,
        layer_cfgs=cfgs, n_weights=len(flat), n_enc_layers=n_enc,
        T=T, PAD=PAD, K=K)

    w_specs = [pl.BlockSpec(w.shape, lambda i: (0, 0)) for w in flat]

    recon, encode = pl.pallas_call(
        kern,
        out_shape=(jax.ShapeDtypeStruct((B, out_ch, T), x.dtype),
                   jax.ShapeDtypeStruct((B, enc_ch, T), x.dtype)),
        grid=(B,),
        in_specs=[pl.BlockSpec((None, cin0, T), lambda i: (i, 0, 0))] + w_specs,
        out_specs=(pl.BlockSpec((None, out_ch, T), lambda i: (i, 0, 0)),
                   pl.BlockSpec((None, enc_ch, T), lambda i: (i, 0, 0))),
        scratch_shapes=[pltpu.VMEM((cmax, PAD + T), jnp.float32),
                        pltpu.VMEM((cmax, PAD + T), jnp.float32)],
        compiler_params=pltpu.CompilerParams(
            dimension_semantics=("parallel",)),   # both TCs on v7x when B >= 2
    )(x, *flat)

    return jnp.transpose(recon, (0, 2, 1)), jnp.transpose(encode, (0, 2, 1))


# ---------------------------------------------------------------------------
# Deterministic parameter init (matches the PyTorch module's shapes)
# ---------------------------------------------------------------------------
def init_tcn_params(key, in_ch, channels, K):
    params = []
    c_in = in_ch
    for c_out in channels:
        key, k1, k2, k3, k4, k5, k6 = jax.random.split(key, 7)
        p = {
            "w1": 0.1 * jax.random.normal(k1, (c_out, c_in, K), jnp.float32),
            "b1": 0.1 * jax.random.normal(k2, (c_out,), jnp.float32),
            "w2": 0.1 * jax.random.normal(k3, (c_out, c_out, K), jnp.float32),
            "b2": 0.1 * jax.random.normal(k4, (c_out,), jnp.float32),
        }
        if c_in != c_out:
            p["wd"] = 0.1 * jax.random.normal(k5, (c_out, c_in, 1), jnp.float32)
            p["bd"] = 0.1 * jax.random.normal(k6, (c_out,), jnp.float32)
        else:
            p["wd"] = None
            p["bd"] = None
        params.append(p)
        c_in = c_out
    return params, key


# ---------------------------------------------------------------------------
# Pure-JAX reference (for correctness check)
# ---------------------------------------------------------------------------
def _ref_conv(x, w, b, dilation):
    pad = (w.shape[-1] - 1) * dilation
    y = jax.lax.conv_general_dilated(
        x, w, window_strides=(1,), padding=[(pad, 0)], rhs_dilation=(dilation,),
        dimension_numbers=("NCH", "OIH", "NCH"))
    return y + b.reshape(1, -1, 1)


def _ref_block(x, p, dilation):
    h = jax.nn.relu(_ref_conv(x, p["w1"], p["b1"], dilation))
    h = jax.nn.relu(_ref_conv(h, p["w2"], p["b2"], dilation))
    res = x if p["wd"] is None else _ref_conv(x, p["wd"], p["bd"], 1)
    return jax.nn.relu(h + res)


def _ref_forward(x_btc, enc_params, dec_params):
    x = jnp.transpose(x_btc, (0, 2, 1))
    e = x
    for i, p in enumerate(enc_params):
        e = _ref_block(e, p, 2 ** i)
    r = e
    for i, p in enumerate(dec_params):
        r = _ref_block(r, p, 2 ** i)
    return jnp.transpose(r, (0, 2, 1)), jnp.transpose(e, (0, 2, 1))


# ---------------------------------------------------------------------------
if __name__ == "__main__":
    # Module hyper-params (small, consistent with the forward pass)
    input_size = 4
    output_size = 4
    num_channels = [8, 16]
    kernel_size = 3
    # dropout = 0.2 (identity at inference)

    B, T = 2, 16
    key = jax.random.PRNGKey(0)
    key, kx = jax.random.split(key)
    x = jax.random.normal(kx, (B, T, input_size), jnp.float32)   # (B, T, C_in)

    enc_params, key = init_tcn_params(key, input_size, num_channels, kernel_size)
    dec_channels = list(reversed(num_channels[:-1])) + [output_size]
    dec_params, key = init_tcn_params(key, num_channels[-1], dec_channels, kernel_size)

    prepared = prepare_params(enc_params, dec_params, kernel_size)
    fwd = jax.jit(lambda xb: fused_autoencoder_forward(xb, prepared))

    recon, encode = fwd(x)
    recon = jax.block_until_ready(recon)
    encode = jax.block_until_ready(encode)

    # Correctness check against pure-JAX reference
    recon_ref, encode_ref = _ref_forward(x, enc_params, dec_params)
    assert recon.shape == (B, T, output_size), recon.shape
    assert encode.shape == (B, T, num_channels[-1]), encode.shape
    assert jnp.allclose(recon, recon_ref, atol=1e-4, rtol=1e-4)
    assert jnp.allclose(encode, encode_ref, atol=1e-4, rtol=1e-4)

    print("KERNEL_OK")
</pallas_src>

<mosaic_0001>
module attributes {stable_mosaic.version = 11 : i64} {
  func.func @_fused_tcn_ae_kernel(%arg0: i32, %arg1: memref<1x4x16xf32, #tpu.memory_space<vmem>>, %arg2: memref<8x12xf32, #tpu.memory_space<vmem>>, %arg3: memref<8x1xf32, #tpu.memory_space<vmem>>, %arg4: memref<8x24xf32, #tpu.memory_space<vmem>>, %arg5: memref<8x1xf32, #tpu.memory_space<vmem>>, %arg6: memref<8x4xf32, #tpu.memory_space<vmem>>, %arg7: memref<8x1xf32, #tpu.memory_space<vmem>>, %arg8: memref<16x24xf32, #tpu.memory_space<vmem>>, %arg9: memref<16x1xf32, #tpu.memory_space<vmem>>, %arg10: memref<16x48xf32, #tpu.memory_space<vmem>>, %arg11: memref<16x1xf32, #tpu.memory_space<vmem>>, %arg12: memref<16x8xf32, #tpu.memory_space<vmem>>, %arg13: memref<16x1xf32, #tpu.memory_space<vmem>>, %arg14: memref<8x48xf32, #tpu.memory_space<vmem>>, %arg15: memref<8x1xf32, #tpu.memory_space<vmem>>, %arg16: memref<8x24xf32, #tpu.memory_space<vmem>>, %arg17: memref<8x1xf32, #tpu.memory_space<vmem>>, %arg18: memref<8x16xf32, #tpu.memory_space<vmem>>, %arg19: memref<8x1xf32, #tpu.memory_space<vmem>>, %arg20: memref<4x24xf32, #tpu.memory_space<vmem>>, %arg21: memref<4x1xf32, #tpu.memory_space<vmem>>, %arg22: memref<4x12xf32, #tpu.memory_space<vmem>>, %arg23: memref<4x1xf32, #tpu.memory_space<vmem>>, %arg24: memref<4x8xf32, #tpu.memory_space<vmem>>, %arg25: memref<4x1xf32, #tpu.memory_space<vmem>>, %arg26: memref<1x4x16xf32, #tpu.memory_space<vmem>>, %arg27: memref<1x16x16xf32, #tpu.memory_space<vmem>>, %arg28: memref<16x144xf32, #tpu.memory_space<vmem>>, %arg29: memref<16x144xf32, #tpu.memory_space<vmem>>) attributes {dimension_semantics = [#tpu.dimension_semantics<parallel>], iteration_bounds = array<i64: 2>, scalar_prefetch = 0 : i64, scratch_operands = 2 : i64, tpu.core_type = #tpu.core_type<tc>, window_params = [{transform_indices = @transform_0, window_bounds = array<i64: 1, 4, 16>}, {pipeline_mode = #tpu.pipeline_mode<synchronous>, transform_indices = @transform_1, window_bounds = array<i64: 8, 12>}, {pipeline_mode = #tpu.pipeline_mode<synchronous>, transform_indices = @transform_2, window_bounds = array<i64: 8, 1>}, {pipeline_mode = #tpu.pipeline_mode<synchronous>, transform_indices = @transform_3, window_bounds = array<i64: 8, 24>}, {pipeline_mode = #tpu.pipeline_mode<synchronous>, transform_indices = @transform_4, window_bounds = array<i64: 8, 1>}, {pipeline_mode = #tpu.pipeline_mode<synchronous>, transform_indices = @transform_5, window_bounds = array<i64: 8, 4>}, {pipeline_mode = #tpu.pipeline_mode<synchronous>, transform_indices = @transform_6, window_bounds = array<i64: 8, 1>}, {pipeline_mode = #tpu.pipeline_mode<synchronous>, transform_indices = @transform_7, window_bounds = array<i64: 16, 24>}, {pipeline_mode = #tpu.pipeline_mode<synchronous>, transform_indices = @transform_8, window_bounds = array<i64: 16, 1>}, {pipeline_mode = #tpu.pipeline_mode<synchronous>, transform_indices = @transform_9, window_bounds = array<i64: 16, 48>}, {pipeline_mode = #tpu.pipeline_mode<synchronous>, transform_indices = @transform_10, window_bounds = array<i64: 16, 1>}, {pipeline_mode = #tpu.pipeline_mode<synchronous>, transform_indices = @transform_11, window_bounds = array<i64: 16, 8>}, {pipeline_mode = #tpu.pipeline_mode<synchronous>, transform_indices = @transform_12, window_bounds = array<i64: 16, 1>}, {pipeline_mode = #tpu.pipeline_mode<synchronous>, transform_indices = @transform_13, window_bounds = array<i64: 8, 48>}, {pipeline_mode = #tpu.pipeline_mode<synchronous>, transform_indices = @transform_14, window_bounds = array<i64: 8, 1>}, {pipeline_mode = #tpu.pipeline_mode<synchronous>, transform_indices = @transform_15, window_bounds = array<i64: 8, 24>}, {pipeline_mode = #tpu.pipeline_mode<synchronous>, transform_indices = @transform_16, window_bounds = array<i64: 8, 1>}, {pipeline_mode = #tpu.pipeline_mode<synchronous>, transform_indices = @transform_17, window_bounds = array<i64: 8, 16>}, {pipeline_mode = #tpu.pipeline_mode<synchronous>, transform_indices = @transform_18, window_bounds = array<i64: 8, 1>}, {pipeline_mode = #tpu.pipeline_mode<synchronous>, transform_indices = @transform_19, window_bounds = array<i64: 4, 24>}, {pipeline_mode = #tpu.pipeline_mode<synchronous>, transform_indices = @transform_20, window_bounds = array<i64: 4, 1>}, {pipeline_mode = #tpu.pipeline_mode<synchronous>, transform_indices = @transform_21, window_bounds = array<i64: 4, 12>}, {pipeline_mode = #tpu.pipeline_mode<synchronous>, transform_indices = @transform_22, window_bounds = array<i64: 4, 1>}, {pipeline_mode = #tpu.pipeline_mode<synchronous>, transform_indices = @transform_23, window_bounds = array<i64: 4, 8>}, {pipeline_mode = #tpu.pipeline_mode<synchronous>, transform_indices = @transform_24, window_bounds = array<i64: 4, 1>}, {transform_indices = @transform_25, window_bounds = array<i64: 1, 4, 16>}, {transform_indices = @transform_26, window_bounds = array<i64: 1, 16, 16>}]} {
    %cst = arith.constant 0.000000e+00 : f32
    %0 = vector.broadcast %cst : f32 to vector<16x144xf32>
    %c0 = arith.constant 0 : index
    %c0_0 = arith.constant 0 : index
    %1 = vector.load %arg28[%c0, %c0_0] : memref<16x144xf32, #tpu.memory_space<vmem>>, vector<16x144xf32>
    tpu.vector_store %arg28[%c0, %c0_0], %0 {strides = array<i32>} : memref<16x144xf32, #tpu.memory_space<vmem>>, vector<16x144xf32>,
    %cst_1 = arith.constant 0.000000e+00 : f32
    %2 = vector.broadcast %cst_1 : f32 to vector<16x144xf32>
    %c0_2 = arith.constant 0 : index
    %c0_3 = arith.constant 0 : index
    %3 = vector.load %arg29[%c0_2, %c0_3] : memref<16x144xf32, #tpu.memory_space<vmem>>, vector<16x144xf32>
    tpu.vector_store %arg29[%c0_2, %c0_3], %2 {strides = array<i32>} : memref<16x144xf32, #tpu.memory_space<vmem>>, vector<16x144xf32>,
    %c0_4 = arith.constant 0 : index
    %c0_5 = arith.constant 0 : index
    %c0_6 = arith.constant 0 : index
    %4 = vector.load %arg1[%c0_4, %c0_5, %c0_6] : memref<1x4x16xf32, #tpu.memory_space<vmem>>, vector<1x4x16xf32>
    %5 = vector.shape_cast %4 : vector<1x4x16xf32> to vector<4x16xf32>
    %c0_7 = arith.constant 0 : index
    %c128 = arith.constant 128 : index
    %6 = vector.load %arg28[%c0_7, %c128] : memref<16x144xf32, #tpu.memory_space<vmem>>, vector<4x16xf32>
    tpu.vector_store %arg28[%c0_7, %c128], %5 {strides = array<i32>} : memref<16x144xf32, #tpu.memory_space<vmem>>, vector<4x16xf32>,
    %c0_8 = arith.constant 0 : index
    %c126 = arith.constant 126 : index
    %7 = vector.load %arg28[%c0_8, %c126] : memref<16x144xf32, #tpu.memory_space<vmem>>, vector<4x16xf32>
    %c0_9 = arith.constant 0 : index
    %c127 = arith.constant 127 : index
    %8 = vector.load %arg28[%c0_9, %c127] : memref<16x144xf32, #tpu.memory_space<vmem>>, vector<4x16xf32>
    %c0_10 = arith.constant 0 : index
    %c128_11 = arith.constant 128 : index
    %9 = vector.load %arg28[%c0_10, %c128_11] : memref<16x144xf32, #tpu.memory_space<vmem>>, vector<4x16xf32>
    %10 = tpu.concatenate %7, %8, %9 in 0 : vector<4x16xf32>, vector<4x16xf32>, vector<4x16xf32> -> vector<12x16xf32>
    %c0_12 = arith.constant 0 : index
    %c0_13 = arith.constant 0 : index
    %11 = vector.load %arg2[%c0_12, %c0_13] : memref<8x12xf32, #tpu.memory_space<vmem>>, vector<8x12xf32>
    %cst_14 = arith.constant dense<0.000000e+00> : vector<8x16xf32>
    %12 = tpu.matmul %11, %10, %cst_14 {dimension_numbers = #tpu.dot_dimension_numbers<[1], [0], [0], [1], [0, 0, 1, 1], [], []>} : vector<8x12xf32>, vector<12x16xf32>, vector<8x16xf32> -> vector<8x16xf32>
    %c0_15 = arith.constant 0 : index
    %c0_16 = arith.constant 0 : index
    %13 = vector.load %arg3[%c0_15, %c0_16] : memref<8x1xf32, #tpu.memory_space<vmem>>, vector<8x1xf32>
    %14 = vector.broadcast %13 : vector<8x1xf32> to vector<8x16xf32>
    %15 = arith.addf %12, %14 : vector<8x16xf32>
    %cst_17 = arith.constant 0.000000e+00 : f32
    %16 = vector.broadcast %cst_17 : f32 to vector<8x16xf32>
    %17 = arith.maximumf %15, %16 : vector<8x16xf32>
    %c0_18 = arith.constant 0 : index
    %c128_19 = arith.constant 128 : index
    %18 = vector.load %arg29[%c0_18, %c128_19] : memref<16x144xf32, #tpu.memory_space<vmem>>, vector<8x16xf32>
    tpu.vector_store %arg29[%c0_18, %c128_19], %17 {strides = array<i32>} : memref<16x144xf32, #tpu.memory_space<vmem>>, vector<8x16xf32>,
    %c0_20 = arith.constant 0 : index
    %c126_21 = arith.constant 126 : index
    %19 = vector.load %arg29[%c0_20, %c126_21] : memref<16x144xf32, #tpu.memory_space<vmem>>, vector<8x16xf32>
    %c0_22 = arith.constant 0 : index
    %c127_23 = arith.constant 127 : index
    %20 = vector.load %arg29[%c0_22, %c127_23] : memref<16x144xf32, #tpu.memory_space<vmem>>, vector<8x16xf32>
    %c0_24 = arith.constant 0 : index
    %c128_25 = arith.constant 128 : index
    %21 = vector.load %arg29[%c0_24, %c128_25] : memref<16x144xf32, #tpu.memory_space<vmem>>, vector<8x16xf32>
    %22 = tpu.concatenate %19, %20, %21 in 0 : vector<8x16xf32>, vector<8x16xf32>, vector<8x16xf32> -> vector<24x16xf32>
    %c0_26 = arith.constant 0 : index
    %c0_27 = arith.constant 0 : index
    %23 = vector.load %arg4[%c0_26, %c0_27] : memref<8x24xf32, #tpu.memory_space<vmem>>, vector<8x24xf32>
    %cst_28 = arith.constant dense<0.000000e+00> : vector<8x16xf32>
    %24 = tpu.matmul %23, %22, %cst_28 {dimension_numbers = #tpu.dot_dimension_numbers<[1], [0], [0], [1], [0, 0, 1, 1], [], []>} : vector<8x24xf32>, vector<24x16xf32>, vector<8x16xf32> -> vector<8x16xf32>
    %c0_29 = arith.constant 0 : index
    %c0_30 = arith.constant 0 : index
    %25 = vector.load %arg5[%c0_29, %c0_30] : memref<8x1xf32, #tpu.memory_space<vmem>>, vector<8x1xf32>
    %26 = vector.broadcast %25 : vector<8x1xf32> to vector<8x16xf32>
    %27 = arith.addf %24, %26 : vector<8x16xf32>
    %cst_31 = arith.constant 0.000000e+00 : f32
    %28 = vector.broadcast %cst_31 : f32 to vector<8x16xf32>
    %29 = arith.maximumf %27, %28 : vector<8x16xf32>
    %c0_32 = arith.constant 0 : index
    %c128_33 = arith.constant 128 : index
    %30 = vector.load %arg28[%c0_32, %c128_33] : memref<16x144xf32, #tpu.memory_space<vmem>>, vector<4x16xf32>
    %c0_34 = arith.constant 0 : index
    %c0_35 = arith.constant 0 : index
    %31 = vector.load %arg6[%c0_34, %c0_35] : memref<8x4xf32, #tpu.memory_space<vmem>>, vector<8x4xf32>
    %cst_36 = arith.constant dense<0.000000e+00> : vector<8x16xf32>
    %32 = tpu.matmul %31, %30, %cst_36 {dimension_numbers = #tpu.dot_dimension_numbers<[1], [0], [0], [1], [0, 0, 1, 1], [], []>} : vector<8x4xf32>, vector<4x16xf32>, vector<8x16xf32> -> vector<8x16xf32>
    %c0_37 = arith.constant 0 : index
    %c0_38 = arith.constant 0 : index
    %33 = vector.load %arg7[%c0_37, %c0_38] : memref<8x1xf32, #tpu.memory_space<vmem>>, vector<8x1xf32>
    %34 = vector.broadcast %33 : vector<8x1xf32> to vector<8x16xf32>
    %35 = arith.addf %32, %34 : vector<8x16xf32>
    %36 = arith.addf %29, %35 : vector<8x16xf32>
    %cst_39 = arith.constant 0.000000e+00 : f32
    %37 = vector.broadcast %cst_39 : f32 to vector<8x16xf32>
    %38 = arith.maximumf %36, %37 : vector<8x16xf32>
    %c0_40 = arith.constant 0 : index
    %c128_41 = arith.constant 128 : index
    %39 = vector.load %arg28[%c0_40, %c128_41] : memref<16x144xf32, #tpu.memory_space<vmem>>, vector<8x16xf32>
    tpu.vector_store %arg28[%c0_40, %c128_41], %38 {strides = array<i32>} : memref<16x144xf32, #tpu.memory_space<vmem>>, vector<8x16xf32>,
    %c0_42 = arith.constant 0 : index
    %c124 = arith.constant 124 : index
    %40 = vector.load %arg28[%c0_42, %c124] : memref<16x144xf32, #tpu.memory_space<vmem>>, vector<8x16xf32>
    %c0_43 = arith.constant 0 : index
    %c126_44 = arith.constant 126 : index
    %41 = vector.load %arg28[%c0_43, %c126_44] : memref<16x144xf32, #tpu.memory_space<vmem>>, vector<8x16xf32>
    %c0_45 = arith.constant 0 : index
    %c128_46 = arith.constant 128 : index
    %42 = vector.load %arg28[%c0_45, %c128_46] : memref<16x144xf32, #tpu.memory_space<vmem>>, vector<8x16xf32>
    %43 = tpu.concatenate %40, %41, %42 in 0 : vector<8x16xf32>, vector<8x16xf32>, vector<8x16xf32> -> vector<24x16xf32>
    %c0_47 = arith.constant 0 : index
    %c0_48 = arith.constant 0 : index
    %44 = vector.load %arg8[%c0_47, %c0_48] : memref<16x24xf32, #tpu.memory_space<vmem>>, vector<16x24xf32>
    %cst_49 = arith.constant dense<0.000000e+00> : vector<16x16xf32>
    %45 = tpu.matmul %44, %43, %cst_49 {dimension_numbers = #tpu.dot_dimension_numbers<[1], [0], [0], [1], [0, 0, 1, 1], [], []>} : vector<16x24xf32>, vector<24x16xf32>, vector<16x16xf32> -> vector<16x16xf32>
    %c0_50 = arith.constant 0 : index
    %c0_51 = arith.constant 0 : index
    %46 = vector.load %arg9[%c0_50, %c0_51] : memref<16x1xf32, #tpu.memory_space<vmem>>, vector<16x1xf32>
    %47 = vector.broadcast %46 : vector<16x1xf32> to vector<16x16xf32>
    %48 = arith.addf %45, %47 : vector<16x16xf32>
    %cst_52 = arith.constant 0.000000e+00 : f32
    %49 = vector.broadcast %cst_52 : f32 to vector<16x16xf32>
    %50 = arith.maximumf %48, %49 : vector<16x16xf32>
    %c0_53 = arith.constant 0 : index
    %c128_54 = arith.constant 128 : index
    %51 = vector.load %arg29[%c0_53, %c128_54] : memref<16x144xf32, #tpu.memory_space<vmem>>, vector<16x16xf32>
    tpu.vector_store %arg29[%c0_53, %c128_54], %50 {strides = array<i32>} : memref<16x144xf32, #tpu.memory_space<vmem>>, vector<16x16xf32>,
    %c0_55 = arith.constant 0 : index
    %c124_56 = arith.constant 124 : index
    %52 = vector.load %arg29[%c0_55, %c124_56] : memref<16x144xf32, #tpu.memory_space<vmem>>, vector<16x16xf32>
    %c0_57 = arith.constant 0 : index
    %c126_58 = arith.constant 126 : index
    %53 = vector.load %arg29[%c0_57, %c126_58] : memref<16x144xf32, #tpu.memory_space<vmem>>, vector<16x16xf32>
    %c0_59 = arith.constant 0 : index
    %c128_60 = arith.constant 128 : index
    %54 = vector.load %arg29[%c0_59, %c128_60] : memref<16x144xf32, #tpu.memory_space<vmem>>, vector<16x16xf32>
    %55 = tpu.concatenate %52, %53, %54 in 0 : vector<16x16xf32>, vector<16x16xf32>, vector<16x16xf32> -> vector<48x16xf32>
    %c0_61 = arith.constant 0 : index
    %c0_62 = arith.constant 0 : index
    %56 = vector.load %arg10[%c0_61, %c0_62] : memref<16x48xf32, #tpu.memory_space<vmem>>, vector<16x48xf32>
    %cst_63 = arith.constant dense<0.000000e+00> : vector<16x16xf32>
    %57 = tpu.matmul %56, %55, %cst_63 {dimension_numbers = #tpu.dot_dimension_numbers<[1], [0], [0], [1], [0, 0, 1, 1], [], []>} : vector<16x48xf32>, vector<48x16xf32>, vector<16x16xf32> -> vector<16x16xf32>
    %c0_64 = arith.constant 0 : index
    %c0_65 = arith.constant 0 : index
    %58 = vector.load %arg11[%c0_64, %c0_65] : memref<16x1xf32, #tpu.memory_space<vmem>>, vector<16x1xf32>
    %59 = vector.broadcast %58 : vector<16x1xf32> to vector<16x16xf32>
    %60 = arith.addf %57, %59 : vector<16x16xf32>
    %cst_66 = arith.constant 0.000000e+00 : f32
    %61 = vector.broadcast %cst_66 : f32 to vector<16x16xf32>
    %62 = arith.maximumf %60, %61 : vector<16x16xf32>
    %c0_67 = arith.constant 0 : index
    %c128_68 = arith.constant 128 : index
    %63 = vector.load %arg28[%c0_67, %c128_68] : memref<16x144xf32, #tpu.memory_space<vmem>>, vector<8x16xf32>
    %c0_69 = arith.constant 0 : index
    %c0_70 = arith.constant 0 : index
    %64 = vector.load %arg12[%c0_69, %c0_70] : memref<16x8xf32, #tpu.memory_space<vmem>>, vector<16x8xf32>
    %cst_71 = arith.constant dense<0.000000e+00> : vector<16x16xf32>
    %65 = tpu.matmul %64, %63, %cst_71 {dimension_numbers = #tpu.dot_dimension_numbers<[1], [0], [0], [1], [0, 0, 1, 1], [], []>} : vector<16x8xf32>, vector<8x16xf32>, vector<16x16xf32> -> vector<16x16xf32>
    %c0_72 = arith.constant 0 : index
    %c0_73 = arith.constant 0 : index
    %66 = vector.load %arg13[%c0_72, %c0_73] : memref<16x1xf32, #tpu.memory_space<vmem>>, vector<16x1xf32>
    %67 = vector.broadcast %66 : vector<16x1xf32> to vector<16x16xf32>
    %68 = arith.addf %65, %67 : vector<16x16xf32>
    %69 = arith.addf %62, %68 : vector<16x16xf32>
    %cst_74 = arith.constant 0.000000e+00 : f32
    %70 = vector.broadcast %cst_74 : f32 to vector<16x16xf32>
    %71 = arith.maximumf %69, %70 : vector<16x16xf32>
    %c0_75 = arith.constant 0 : index
    %c0_76 = arith.constant 0 : index
    %c0_77 = arith.constant 0 : index
    %72 = vector.load %arg27[%c0_75, %c0_76, %c0_77] : memref<1x16x16xf32, #tpu.memory_space<vmem>>, vector<1x16x16xf32>
    %73 = vector.shape_cast %72 : vector<1x16x16xf32> to vector<16x16xf32>
    %74 = vector.shape_cast %71 : vector<16x16xf32> to vector<1x16x16xf32>
    tpu.vector_store %arg27[%c0_75, %c0_76, %c0_77], %74 {strides = array<i32>} : memref<1x16x16xf32, #tpu.memory_space<vmem>>, vector<1x16x16xf32>,
    %c0_78 = arith.constant 0 : index
    %c128_79 = arith.constant 128 : index
    %75 = vector.load %arg28[%c0_78, %c128_79] : memref<16x144xf32, #tpu.memory_space<vmem>>, vector<16x16xf32>
    tpu.vector_store %arg28[%c0_78, %c128_79], %71 {strides = array<i32>} : memref<16x144xf32, #tpu.memory_space<vmem>>, vector<16x16xf32>,
    %c0_80 = arith.constant 0 : index
    %c126_81 = arith.constant 126 : index
    %76 = vector.load %arg28[%c0_80, %c126_81] : memref<16x144xf32, #tpu.memory_space<vmem>>, vector<16x16xf32>
    %c0_82 = arith.constant 0 : index
    %c127_83 = arith.constant 127 : index
    %77 = vector.load %arg28[%c0_82, %c127_83] : memref<16x144xf32, #tpu.memory_space<vmem>>, vector<16x16xf32>
    %c0_84 = arith.constant 0 : index
    %c128_85 = arith.constant 128 : index
    %78 = vector.load %arg28[%c0_84, %c128_85] : memref<16x144xf32, #tpu.memory_space<vmem>>, vector<16x16xf32>
    %79 = tpu.concatenate %76, %77, %78 in 0 : vector<16x16xf32>, vector<16x16xf32>, vector<16x16xf32> -> vector<48x16xf32>
    %c0_86 = arith.constant 0 : index
    %c0_87 = arith.constant 0 : index
    %80 = vector.load %arg14[%c0_86, %c0_87] : memref<8x48xf32, #tpu.memory_space<vmem>>, vector<8x48xf32>
    %cst_88 = arith.constant dense<0.000000e+00> : vector<8x16xf32>
    %81 = tpu.matmul %80, %79, %cst_88 {dimension_numbers = #tpu.dot_dimension_numbers<[1], [0], [0], [1], [0, 0, 1, 1], [], []>} : vector<8x48xf32>, vector<48x16xf32>, vector<8x16xf32> -> vector<8x16xf32>
    %c0_89 = arith.constant 0 : index
    %c0_90 = arith.constant 0 : index
    %82 = vector.load %arg15[%c0_89, %c0_90] : memref<8x1xf32, #tpu.memory_space<vmem>>, vector<8x1xf32>
    %83 = vector.broadcast %82 : vector<8x1xf32> to vector<8x16xf32>
    %84 = arith.addf %81, %83 : vector<8x16xf32>
    %cst_91 = arith.constant 0.000000e+00 : f32
    %85 = vector.broadcast %cst_91 : f32 to vector<8x16xf32>
    %86 = arith.maximumf %84, %85 : vector<8x16xf32>
    %c0_92 = arith.constant 0 : index
    %c128_93 = arith.constant 128 : index
    %87 = vector.load %arg29[%c0_92, %c128_93] : memref<16x144xf32, #tpu.memory_space<vmem>>, vector<8x16xf32>
    tpu.vector_store %arg29[%c0_92, %c128_93], %86 {strides = array<i32>} : memref<16x144xf32, #tpu.memory_space<vmem>>, vector<8x16xf32>,
    %c0_94 = arith.constant 0 : index
    %c126_95 = arith.constant 126 : index
    %88 = vector.load %arg29[%c0_94, %c126_95] : memref<16x144xf32, #tpu.memory_space<vmem>>, vector<8x16xf32>
    %c0_96 = arith.constant 0 : index
    %c127_97 = arith.constant 127 : index
    %89 = vector.load %arg29[%c0_96, %c127_97] : memref<16x144xf32, #tpu.memory_space<vmem>>, vector<8x16xf32>
    %c0_98 = arith.constant 0 : index
    %c128_99 = arith.constant 128 : index
    %90 = vector.load %arg29[%c0_98, %c128_99] : memref<16x144xf32, #tpu.memory_space<vmem>>, vector<8x16xf32>
    %91 = tpu.concatenate %88, %89, %90 in 0 : vector<8x16xf32>, vector<8x16xf32>, vector<8x16xf32> -> vector<24x16xf32>
    %c0_100 = arith.constant 0 : index
    %c0_101 = arith.constant 0 : index
    %92 = vector.load %arg16[%c0_100, %c0_101] : memref<8x24xf32, #tpu.memory_space<vmem>>, vector<8x24xf32>
    %cst_102 = arith.constant dense<0.000000e+00> : vector<8x16xf32>
    %93 = tpu.matmul %92, %91, %cst_102 {dimension_numbers = #tpu.dot_dimension_numbers<[1], [0], [0], [1], [0, 0, 1, 1], [], []>} : vector<8x24xf32>, vector<24x16xf32>, vector<8x16xf32> -> vector<8x16xf32>
    %c0_103 = arith.constant 0 : index
    %c0_104 = arith.constant 0 : index
    %94 = vector.load %arg17[%c0_103, %c0_104] : memref<8x1xf32, #tpu.memory_space<vmem>>, vector<8x1xf32>
    %95 = vector.broadcast %94 : vector<8x1xf32> to vector<8x16xf32>
    %96 = arith.addf %93, %95 : vector<8x16xf32>
    %cst_105 = arith.constant 0.000000e+00 : f32
    %97 = vector.broadcast %cst_105 : f32 to vector<8x16xf32>
    %98 = arith.maximumf %96, %97 : vector<8x16xf32>
    %c0_106 = arith.constant 0 : index
    %c128_107 = arith.constant 128 : index
    %99 = vector.load %arg28[%c0_106, %c128_107] : memref<16x144xf32, #tpu.memory_space<vmem>>, vector<16x16xf32>
    %c0_108 = arith.constant 0 : index
    %c0_109 = arith.constant 0 : index
    %100 = vector.load %arg18[%c0_108, %c0_109] : memref<8x16xf32, #tpu.memory_space<vmem>>, vector<8x16xf32>
    %cst_110 = arith.constant dense<0.000000e+00> : vector<8x16xf32>
    %101 = tpu.matmul %100, %99, %cst_110 {dimension_numbers = #tpu.dot_dimension_numbers<[1], [0], [0], [1], [0, 0, 1, 1], [], []>} : vector<8x16xf32>, vector<16x16xf32>, vector<8x16xf32> -> vector<8x16xf32>
    %c0_111 = arith.constant 0 : index
    %c0_112 = arith.constant 0 : index
    %102 = vector.load %arg19[%c0_111, %c0_112] : memref<8x1xf32, #tpu.memory_space<vmem>>, vector<8x1xf32>
    %103 = vector.broadcast %102 : vector<8x1xf32> to vector<8x16xf32>
    %104 = arith.addf %101, %103 : vector<8x16xf32>
    %105 = arith.addf %98, %104 : vector<8x16xf32>
    %cst_113 = arith.constant 0.000000e+00 : f32
    %106 = vector.broadcast %cst_113 : f32 to vector<8x16xf32>
    %107 = arith.maximumf %105, %106 : vector<8x16xf32>
    %c0_114 = arith.constant 0 : index
    %c128_115 = arith.constant 128 : index
    %108 = vector.load %arg28[%c0_114, %c128_115] : memref<16x144xf32, #tpu.memory_space<vmem>>, vector<8x16xf32>
    tpu.vector_store %arg28[%c0_114, %c128_115], %107 {strides = array<i32>} : memref<16x144xf32, #tpu.memory_space<vmem>>, vector<8x16xf32>,
    %c0_116 = arith.constant 0 : index
    %c124_117 = arith.constant 124 : index
    %109 = vector.load %arg28[%c0_116, %c124_117] : memref<16x144xf32, #tpu.memory_space<vmem>>, vector<8x16xf32>
    %c0_118 = arith.constant 0 : index
    %c126_119 = arith.constant 126 : index
    %110 = vector.load %arg28[%c0_118, %c126_119] : memref<16x144xf32, #tpu.memory_space<vmem>>, vector<8x16xf32>
    %c0_120 = arith.constant 0 : index
    %c128_121 = arith.constant 128 : index
    %111 = vector.load %arg28[%c0_120, %c128_121] : memref<16x144xf32, #tpu.memory_space<vmem>>, vector<8x16xf32>
    %112 = tpu.concatenate %109, %110, %111 in 0 : vector<8x16xf32>, vector<8x16xf32>, vector<8x16xf32> -> vector<24x16xf32>
    %c0_122 = arith.constant 0 : index
    %c0_123 = arith.constant 0 : index
    %113 = vector.load %arg20[%c0_122, %c0_123] : memref<4x24xf32, #tpu.memory_space<vmem>>, vector<4x24xf32>
    %cst_124 = arith.constant dense<0.000000e+00> : vector<4x16xf32>
    %114 = tpu.matmul %113, %112, %cst_124 {dimension_numbers = #tpu.dot_dimension_numbers<[1], [0], [0], [1], [0, 0, 1, 1], [], []>} : vector<4x24xf32>, vector<24x16xf32>, vector<4x16xf32> -> vector<4x16xf32>
    %c0_125 = arith.constant 0 : index
    %c0_126 = arith.constant 0 : index
    %115 = vector.load %arg21[%c0_125, %c0_126] : memref<4x1xf32, #tpu.memory_space<vmem>>, vector<4x1xf32>
    %116 = vector.broadcast %115 : vector<4x1xf32> to vector<4x16xf32>
    %117 = arith.addf %114, %116 : vector<4x16xf32>
    %cst_127 = arith.constant 0.000000e+00 : f32
    %118 = vector.broadcast %cst_127 : f32 to vector<4x16xf32>
    %119 = arith.maximumf %117, %118 : vector<4x16xf32>
    %c0_128 = arith.constant 0 : index
    %c128_129 = arith.constant 128 : index
    %120 = vector.load %arg29[%c0_128, %c128_129] : memref<16x144xf32, #tpu.memory_space<vmem>>, vector<4x16xf32>
    tpu.vector_store %arg29[%c0_128, %c128_129], %119 {strides = array<i32>} : memref<16x144xf32, #tpu.memory_space<vmem>>, vector<4x16xf32>,
    %c0_130 = arith.constant 0 : index
    %c124_131 = arith.constant 124 : index
    %121 = vector.load %arg29[%c0_130, %c124_131] : memref<16x144xf32, #tpu.memory_space<vmem>>, vector<4x16xf32>
    %c0_132 = arith.constant 0 : index
    %c126_133 = arith.constant 126 : index
    %122 = vector.load %arg29[%c0_132, %c126_133] : memref<16x144xf32, #tpu.memory_space<vmem>>, vector<4x16xf32>
    %c0_134 = arith.constant 0 : index
    %c128_135 = arith.constant 128 : index
    %123 = vector.load %arg29[%c0_134, %c128_135] : memref<16x144xf32, #tpu.memory_space<vmem>>, vector<4x16xf32>
    %124 = tpu.concatenate %121, %122, %123 in 0 : vector<4x16xf32>, vector<4x16xf32>, vector<4x16xf32> -> vector<12x16xf32>
    %c0_136 = arith.constant 0 : index
    %c0_137 = arith.constant 0 : index
    %125 = vector.load %arg22[%c0_136, %c0_137] : memref<4x12xf32, #tpu.memory_space<vmem>>, vector<4x12xf32>
    %cst_138 = arith.constant dense<0.000000e+00> : vector<4x16xf32>
    %126 = tpu.matmul %125, %124, %cst_138 {dimension_numbers = #tpu.dot_dimension_numbers<[1], [0], [0], [1], [0, 0, 1, 1], [], []>} : vector<4x12xf32>, vector<12x16xf32>, vector<4x16xf32> -> vector<4x16xf32>
    %c0_139 = arith.constant 0 : index
    %c0_140 = arith.constant 0 : index
    %127 = vector.load %arg23[%c0_139, %c0_140] : memref<4x1xf32, #tpu.memory_space<vmem>>, vector<4x1xf32>
    %128 = vector.broadcast %127 : vector<4x1xf32> to vector<4x16xf32>
    %129 = arith.addf %126, %128 : vector<4x16xf32>
    %cst_141 = arith.constant 0.000000e+00 : f32
    %130 = vector.broadcast %cst_141 : f32 to vector<4x16xf32>
    %131 = arith.maximumf %129, %130 : vector<4x16xf32>
    %c0_142 = arith.constant 0 : index
    %c128_143 = arith.constant 128 : index
    %132 = vector.load %arg28[%c0_142, %c128_143] : memref<16x144xf32, #tpu.memory_space<vmem>>, vector<8x16xf32>
    %c0_144 = arith.constant 0 : index
    %c0_145 = arith.constant 0 : index
    %133 = vector.load %arg24[%c0_144, %c0_145] : memref<4x8xf32, #tpu.memory_space<vmem>>, vector<4x8xf32>
    %cst_146 = arith.constant dense<0.000000e+00> : vector<4x16xf32>
    %134 = tpu.matmul %133, %132, %cst_146 {dimension_numbers = #tpu.dot_dimension_numbers<[1], [0], [0], [1], [0, 0, 1, 1], [], []>} : vector<4x8xf32>, vector<8x16xf32>, vector<4x16xf32> -> vector<4x16xf32>
    %c0_147 = arith.constant 0 : index
    %c0_148 = arith.constant 0 : index
    %135 = vector.load %arg25[%c0_147, %c0_148] : memref<4x1xf32, #tpu.memory_space<vmem>>, vector<4x1xf32>
    %136 = vector.broadcast %135 : vector<4x1xf32> to vector<4x16xf32>
    %137 = arith.addf %134, %136 : vector<4x16xf32>
    %138 = arith.addf %131, %137 : vector<4x16xf32>
    %cst_149 = arith.constant 0.000000e+00 : f32
    %139 = vector.broadcast %cst_149 : f32 to vector<4x16xf32>
    %140 = arith.maximumf %138, %139 : vector<4x16xf32>
    %c0_150 = arith.constant 0 : index
    %c0_151 = arith.constant 0 : index
    %c0_152 = arith.constant 0 : index
    %141 = vector.load %arg26[%c0_150, %c0_151, %c0_152] : memref<1x4x16xf32, #tpu.memory_space<vmem>>, vector<1x4x16xf32>
    %142 = vector.shape_cast %141 : vector<1x4x16xf32> to vector<4x16xf32>
    %143 = vector.shape_cast %140 : vector<4x16xf32> to vector<1x4x16xf32>
    tpu.vector_store %arg26[%c0_150, %c0_151, %c0_152], %143 {strides = array<i32>} : memref<1x4x16xf32, #tpu.memory_space<vmem>>, vector<1x4x16xf32>,
    return
  }
  func.func @transform_0(%arg0: i32) -> (i32, i32, i32) {
    %c0_i32 = arith.constant 0 : i32
    %c0_i32_0 = arith.constant 0 : i32
    %c0_i32_1 = arith.constant 0 : i32
    return %arg0, %c0_i32, %c0_i32_0 : i32, i32, i32
  }
  func.func @transform_1(%arg0: i32) -> (i32, i32) {
    %c0_i32 = arith.constant 0 : i32
    %c0_i32_0 = arith.constant 0 : i32
    %c0_i32_1 = arith.constant 0 : i32
    return %c0_i32, %c0_i32_0 : i32, i32
  }
  func.func @transform_2(%arg0: i32) -> (i32, i32) {
    %c0_i32 = arith.constant 0 : i32
    %c0_i32_0 = arith.constant 0 : i32
    %c0_i32_1 = arith.constant 0 : i32
    return %c0_i32, %c0_i32_0 : i32, i32
  }
  func.func @transform_3(%arg0: i32) -> (i32, i32) {
    %c0_i32 = arith.constant 0 : i32
    %c0_i32_0 = arith.constant 0 : i32
    %c0_i32_1 = arith.constant 0 : i32
    return %c0_i32, %c0_i32_0 : i32, i32
  }
  func.func @transform_4(%arg0: i32) -> (i32, i32) {
    %c0_i32 = arith.constant 0 : i32
    %c0_i32_0 = arith.constant 0 : i32
    %c0_i32_1 = arith.constant 0 : i32
    return %c0_i32, %c0_i32_0 : i32, i32
  }
  func.func @transform_5(%arg0: i32) -> (i32, i32) {
    %c0_i32 = arith.constant 0 : i32
    %c0_i32_0 = arith.constant 0 : i32
    %c0_i32_1 = arith.constant 0 : i32
    return %c0_i32, %c0_i32_0 : i32, i32
  }
  func.func @transform_6(%arg0: i32) -> (i32, i32) {
    %c0_i32 = arith.constant 0 : i32
    %c0_i32_0 = arith.constant 0 : i32
    %c0_i32_1 = arith.constant 0 : i32
    return %c0_i32, %c0_i32_0 : i32, i32
  }
  func.func @transform_7(%arg0: i32) -> (i32, i32) {
    %c0_i32 = arith.constant 0 : i32
    %c0_i32_0 = arith.constant 0 : i32
    %c0_i32_1 = arith.constant 0 : i32
    return %c0_i32, %c0_i32_0 : i32, i32
  }
  func.func @transform_8(%arg0: i32) -> (i32, i32) {
    %c0_i32 = arith.constant 0 : i32
    %c0_i32_0 = arith.constant 0 : i32
    %c0_i32_1 = arith.constant 0 : i32
    return %c0_i32, %c0_i32_0 : i32, i32
  }
  func.func @transform_9(%arg0: i32) -> (i32, i32) {
    %c0_i32 = arith.constant 0 : i32
    %c0_i32_0 = arith.constant 0 : i32
    %c0_i32_1 = arith.constant 0 : i32
    return %c0_i32, %c0_i32_0 : i32, i32
  }
  func.func @transform_10(%arg0: i32) -> (i32, i32) {
    %c0_i32 = arith.constant 0 : i32
    %c0_i32_0 = arith.constant 0 : i32
    %c0_i32_1 = arith.constant 0 : i32
    return %c0_i32, %c0_i32_0 : i32, i32
  }
  func.func @transform_11(%arg0: i32) -> (i32, i32) {
    %c0_i32 = arith.constant 0 : i32
    %c0_i32_0 = arith.constant 0 : i32
    %c0_i32_1 = arith.constant 0 : i32
    return %c0_i32, %c0_i32_0 : i32, i32
  }
  func.func @transform_12(%arg0: i32) -> (i32, i32) {
    %c0_i32 = arith.constant 0 : i32
    %c0_i32_0 = arith.constant 0 : i32
    %c0_i32_1 = arith.constant 0 : i32
    return %c0_i32, %c0_i32_0 : i32, i32
  }
  func.func @transform_13(%arg0: i32) -> (i32, i32) {
    %c0_i32 = arith.constant 0 : i32
    %c0_i32_0 = arith.constant 0 : i32
    %c0_i32_1 = arith.constant 0 : i32
    return %c0_i32, %c0_i32_0 : i32, i32
  }
  func.func @transform_14(%arg0: i32) -> (i32, i32) {
    %c0_i32 = arith.constant 0 : i32
    %c0_i32_0 = arith.constant 0 : i32
    %c0_i32_1 = arith.constant 0 : i32
    return %c0_i32, %c0_i32_0 : i32, i32
  }
  func.func @transform_15(%arg0: i32) -> (i32, i32) {
    %c0_i32 = arith.constant 0 : i32
    %c0_i32_0 = arith.constant 0 : i32
    %c0_i32_1 = arith.constant 0 : i32
    return %c0_i32, %c0_i32_0 : i32, i32
  }
  func.func @transform_16(%arg0: i32) -> (i32, i32) {
    %c0_i32 = arith.constant 0 : i32
    %c0_i32_0 = arith.constant 0 : i32
    %c0_i32_1 = arith.constant 0 : i32
    return %c0_i32, %c0_i32_0 : i32, i32
  }
  func.func @transform_17(%arg0: i32) -> (i32, i32) {
    %c0_i32 = arith.constant 0 : i32
    %c0_i32_0 = arith.constant 0 : i32
    %c0_i32_1 = arith.constant 0 : i32
    return %c0_i32, %c0_i32_0 : i32, i32
  }
  func.func @transform_18(%arg0: i32) -> (i32, i32) {
    %c0_i32 = arith.constant 0 : i32
    %c0_i32_0 = arith.constant 0 : i32
    %c0_i32_1 = arith.constant 0 : i32
    return %c0_i32, %c0_i32_0 : i32, i32
  }
  func.func @transform_19(%arg0: i32) -> (i32, i32) {
    %c0_i32 = arith.constant 0 : i32
    %c0_i32_0 = arith.constant 0 : i32
    %c0_i32_1 = arith.constant 0 : i32
    return %c0_i32, %c0_i32_0 : i32, i32
  }
  func.func @transform_20(%arg0: i32) -> (i32, i32) {
    %c0_i32 = arith.constant 0 : i32
    %c0_i32_0 = arith.constant 0 : i32
    %c0_i32_1 = arith.constant 0 : i32
    return %c0_i32, %c0_i32_0 : i32, i32
  }
  func.func @transform_21(%arg0: i32) -> (i32, i32) {
    %c0_i32 = arith.constant 0 : i32
    %c0_i32_0 = arith.constant 0 : i32
    %c0_i32_1 = arith.constant 0 : i32
    return %c0_i32, %c0_i32_0 : i32, i32
  }
  func.func @transform_22(%arg0: i32) -> (i32, i32) {
    %c0_i32 = arith.constant 0 : i32
    %c0_i32_0 = arith.constant 0 : i32
    %c0_i32_1 = arith.constant 0 : i32
    return %c0_i32, %c0_i32_0 : i32, i32
  }
  func.func @transform_23(%arg0: i32) -> (i32, i32) {
    %c0_i32 = arith.constant 0 : i32
    %c0_i32_0 = arith.constant 0 : i32
    %c0_i32_1 = arith.constant 0 : i32
    return %c0_i32, %c0_i32_0 : i32, i32
  }
  func.func @transform_24(%arg0: i32) -> (i32, i32) {
    %c0_i32 = arith.constant 0 : i32
    %c0_i32_0 = arith.constant 0 : i32
    %c0_i32_1 = arith.constant 0 : i32
    return %c0_i32, %c0_i32_0 : i32, i32
  }
  func.func @transform_25(%arg0: i32) -> (i32, i32, i32) {
    %c0_i32 = arith.constant 0 : i32
    %c0_i32_0 = arith.constant 0 : i32
    %c0_i32_1 = arith.constant 0 : i32
    return %arg0, %c0_i32, %c0_i32_0 : i32, i32, i32
  }
  func.func @transform_26(%arg0: i32) -> (i32, i32, i32) {
    %c0_i32 = arith.constant 0 : i32
    %c0_i32_0 = arith.constant 0 : i32
    %c0_i32_1 = arith.constant 0 : i32
    return %arg0, %c0_i32, %c0_i32_0 : i32, i32, i32
  }
}

</mosaic_0001>

<bundles_post_ra>
// kernel: _lambda_.1
= control target key start
LH: loop header
LB: loop body
LE: loop exit
PB: predicated region body
PF: predicated region fallthrough
CT: control target
= control target key end

     0   :  { %s4637_s0 = inlined_call_operand.hbm [shape: f32[2,4,16], index: 0, kind: input, shape index: {}]   ;;  %s4638_s1 = inlined_call_operand.hbm [shape: f32[8,12], index: 1, kind: input, shape index: {}]   ;;  %s4639_s2 = inlined_call_operand.hbm [shape: f32[8,1], index: 2, kind: input, shape index: {}]   ;;  %s4640_s3 = inlined_call_operand.hbm [shape: f32[8,24], index: 3, kind: input, shape index: {}]   ;;  %s4641_s4 = inlined_call_operand.hbm [shape: f32[8,1], index: 4, kind: input, shape index: {}]   ;;  %s4642_s5 = inlined_call_operand.hbm [shape: f32[8,4], index: 5, kind: input, shape index: {}]   ;;  %s4643_s6 = inlined_call_operand.hbm [shape: f32[8,1], index: 6, kind: input, shape index: {}]   ;;  %s4644_s7 = inlined_call_operand.hbm [shape: f32[16,24], index: 7, kind: input, shape index: {}]   ;;  %s4645_s8 = inlined_call_operand.hbm [shape: f32[16,1], index: 8, kind: input, shape index: {}]   ;;  %s4646_s9 = inlined_call_operand.hbm [shape: f32[16,48], index: 9, kind: input, shape index: {}]   ;;  %s4647_s10 = inlined_call_operand.hbm [shape: f32[16,1], index: 10, kind: input, shape index: {}]   ;;  %s4648_s11 = inlined_call_operand.vmem [shape: f32[16,8], index: 11, kind: input, shape index: {}]   ;;  %s4649_s12 = inlined_call_operand.vmem [shape: f32[16,1], index: 12, kind: input, shape index: {}]   ;;  %s4650_s13 = inlined_call_operand.hbm [shape: f32[8,48], index: 13, kind: input, shape index: {}]   ;;  %s4651_s14 = inlined_call_operand.hbm [shape: f32[8,1], index: 14, kind: input, shape index: {}]   ;;  %s4652_s15 = inlined_call_operand.hbm [shape: f32[8,24], index: 15, kind: input, shape index: {}]   ;;  %s4653_s16 = inlined_call_operand.vmem [shape: f32[8,1], index: 16, kind: input, shape index: {}]   ;;  %s4654_s17 = inlined_call_operand.vmem [shape: f32[8,16], index: 17, kind: input, shape index: {}]   ;;  %s4655_s18 = inlined_call_operand.vmem [shape: f32[8,1], index: 18, kind: input, shape index: {}]   ;;  %s4656_s19 = inlined_call_operand.hbm [shape: f32[4,24], index: 19, kind: input, shape index: {}]   ;;  %s4657_s20 = inlined_call_operand.vmem [shape: f32[4,1], index: 20, kind: input, shape index: {}]   ;;  %s4658_s21 = inlined_call_operand.vmem [shape: f32[4,12], index: 21, kind: input, shape index: {}]   ;;  %s4659_s22 = inlined_call_operand.vmem [shape: f32[4,1], index: 22, kind: input, shape index: {}]   ;;  %s4660_s23 = inlined_call_operand.vmem [shape: f32[4,8], index: 23, kind: input, shape index: {}]   ;;  %s4661_s24 = inlined_call_operand.vmem [shape: f32[4,1], index: 24, kind: input, shape index: {}]   ;;  %s4662_s25 = inlined_call_operand.hbm [shape: f32[2,4,16], index: 25, kind: output, shape index: {0}]   ;;  %s4663_s26 = inlined_call_operand.vmem [shape: f32[2,16,16], index: 26, kind: output, shape index: {1}]  }
   0x1   :  { %4690 = sst [smem:[#allocation38_spill]] %s4637_s0 }
   0x2   :  { %4691 = sst [smem:[#allocation39_spill]] %s4638_s1 }
   0x3   :  { %4692 = sst [smem:[#allocation40_spill]] %s4639_s2 }
   0x4   :  { %4693 = sst [smem:[#allocation41_spill]] %s4640_s3 }
   0x5   :  { %4694 = sst [smem:[#allocation42_spill]] %s4641_s4 }
   0x6   :  { %4695 = sst [smem:[#allocation43_spill]] %s4642_s5 }
   0x7   :  { %4696 = sst [smem:[#allocation44_spill]] %s4643_s6 }
   0x8   :  { %4697 = sst [smem:[#allocation45_spill]] %s4644_s7 }
   0x9   :  { %4698 = sst [smem:[#allocation46_spill]] %s4645_s8 }
   0xa   :  { %4699 = sst [smem:[#allocation47_spill]] %s4646_s9 }
   0xb   :  { %4700 = sst [smem:[#allocation48_spill]] %s4647_s10 }
   0xc   :  { %4701 = sst [smem:[#allocation49_spill]] %s4650_s13 }
   0xd   :  { %4702 = sst [smem:[#allocation50_spill]] %s4651_s14 }
   0xe   :  { %4703 = sst [smem:[#allocation51_spill]] %s4652_s15 }
   0xf   :  { %4704 = sst [smem:[#allocation52_spill]] %s4653_s16 }
  0x10   :  { %4705 = sst [smem:[#allocation53_spill]] %s4654_s17 }
  0x11   :  { %4706 = sst [smem:[#allocation54_spill]] %s4655_s18 }
  0x12   :  { %4707 = sst [smem:[#allocation55_spill]] %s4657_s20 }
  0x13   :  { %4708 = sst [smem:[#allocation56_spill]] %s4658_s21 }
  0x14   :  { %4709 = sst [smem:[#allocation57_spill]] %s4659_s22 }
  0x15   :  { %4710 = sst [smem:[#allocation58_spill]] %s4660_s23 }
  0x16   :  { %4711 = sst [smem:[#allocation59_spill]] %s4661_s24 }
  0x17   :  { %4712 = sst [smem:[#allocation60_spill]] %s4662_s25 }
  0x18   :  { %32 = vsyncpa [#allocation5], 0 }
  0x19   :  { %34 = vsyncpa [#allocation5 + $0x1], 0 }
  0x1a   :  { %35 = vsyncpa [#allocation8], 0 }
  0x1b   :  { %36 = vsyncpa [#allocation11], 0 }
  0x1c   :  { %37 = vsyncpa [#allocation14], 0 }
  0x1d   :  { %38 = vsyncpa [#allocation17], 0 }
  0x1e   :  { %39 = vsyncpa [#allocation20], 0 }
  0x1f   :  { %40 = vsyncpa [#allocation23], 0 }
  0x20   :  { %41 = vsyncpa [#allocation26], 0 }
  0x21   :  { %42 = vsyncpa [#allocation6], 0 }
  0x22   :  { %44 = vsyncpa [#allocation6 + $0x1], 0  ;;  %s3883_s27 = smov 0   ;;  %s3885_s3 = smov 0  }
  0x23   :  { %s3887_s7 = smov 0   ;;  %s3889_s28 = smov 0  }
  0x24 LB: > { %s3720_s8 = smov [#allocation7]   ;;  %s3904_s29 = sadd.s32 4294967295, %s3718_s28   ;;  %s3718_s28 = sphi %s3889_s28, %s4770_s28   ;;  %s3714_s7 = sphi %s3887_s7, %s4769_s7   ;;  %s3710_s3 = sphi %s3885_s3, %s4768_s3   ;;  %s3706_s27 = sphi %s3883_s27, %s4767_s27  }
  0x25   : > { %s650_s4 = sshll.u32 %s3720_s8, 4  ;;  %p2586_p0 = scmp.ge.s32.totalorder %s3718_s28, 1  ;;  %s3909_s4 = int_to_ptr.vmem [resolvable:$true] %s650_s4 }
  0x26   : > { %p4676_p1 = scmp.eq.s32.totalorder %s3904_s29, 0  ;;  %p637_p2 = scmp.lt.s32.totalorder %s3718_s28, 3 }
  0x27   : > { %s3721_s9 = smov [#allocation10]   ;;  %s3722_s2 = smov [#allocation13]  }
  0x28   : > { %p3911_p3 = pnand %p2586_p0, %p637_p2  ;;  %s672_s30 = sshll.u32 %s3721_s9, 4  ;;  %s3918_s30 = int_to_ptr.vmem [resolvable:$true] %s672_s30 }
  0x29   : > { %s694_s5 = sshll.u32 %s3722_s2, 4  ;;  %s3723_s6 = smov [#allocation16]   ;;  %s3926_s5 = int_to_ptr.vmem [resolvable:$true] %s694_s5 }
  0x2a   : > { %s4713_s0 = scalar_select %p3911_p3, 1, 0 }
  0x2b   : > { %p2901_p5 = pneg %p3911_p3  ;;  %s3928_s1 = sshll.u32 %s3723_s6, 4  ;;  %s716_s1 = int_to_ptr.vmem [resolvable:$true] %s3928_s1 }
  0x2c   : > { %s4715_s23 = sld [smem:[#allocation39_spill]] }
  0x2d   : > { %p3922_p6 = pnand %p2901_p5, %p4676_p1 }
  0x2f   : > { %p3938_p8 = pneg %p3922_p6 }
  0x32   : > { %s3202_s21 = scalar_lea.hbm %s4715_s23, 128 }
  0x33   : > { %p3203_p7 = scmp.ne.s32.totalorder %s4715_s23, %s3202_s21  ;;  %p3209_p11 = scmp.lt.u32.totalorder %s3202_s21, %s4715_s23 }
  0x35   : > { %p3205_p9 = pnand %p3938_p8, %p3203_p7 }
  0x37   : > { %p3206_p10 = pneg %p3205_p9 }
  0x39   : > { %p3211_p12 = pnand %p3209_p11, %p3206_p10 }
  0x3b   : > { %3214 = shalt.err (!%p3211_p12)
}
  0x3c   : > { %s3215_s22 = scalar_lea.vmem %s3909_s4, 128  ;;  %p3223_p5 = scmp.lt.s32.totalorder %s3909_s4, %s3909_s4 }
  0x3d   : > { %p3216_p13 = scmp.ne.s32.totalorder %s3909_s4, %s3215_s22  ;;  %p3224_p4 = scmp.lt.s32.totalorder %s3215_s22, %s3215_s22 }
  0x3f   : > { %p3218_p0 = pnand %p3216_p13, %p3938_p8  ;;  %p3225_p7 = por %p3224_p4, %p3223_p5 }
  0x41   : > { %p3219_p2 = pneg %p3218_p0 }
  0x43   : > { %p3226_p9 = pnand %p3225_p7, %p3219_p2 }
  0x45   : > { %3229 = shalt.err (!%p3226_p9)
}
  0x46   : > { %2904 = dma.hbm_to_vmem [thread:$0]  (!%p3922_p6), %s4715_s23, 128, %s3909_s4, [#allocation8]  }
  0x47   : > { %s4717_s9 = sld [smem:[#allocation41_spill]] }
  0x4d   : > { %s3230_s6 = scalar_lea.hbm %s4717_s9, 128 }
  0x4e   : > { %p3231_p10 = scmp.ne.s32.totalorder %s4717_s9, %s3230_s6  ;;  %p3237_p12 = scmp.lt.u32.totalorder %s3230_s6, %s4717_s9 }
  0x50   : > { %p3233_p4 = pnand %p3231_p10, %p3938_p8 }
  0x52   : > { %p3234_p11 = pneg %p3233_p4 }
  0x54   : > { %p3239_p13 = pnand %p3237_p12, %p3234_p11 }
  0x56   : > { %3242 = shalt.err (!%p3239_p13)
}
  0x57   : > { %s3243_s4 = scalar_lea.vmem %s3918_s30, 128  ;;  %p3251_p7 = scmp.lt.s32.totalorder %s3918_s30, %s3918_s30 }
  0x58   : > { %p3244_p0 = scmp.ne.s32.totalorder %s3918_s30, %s3243_s4  ;;  %p3252_p9 = scmp.lt.s32.totalorder %s3243_s4, %s3243_s4 }
  0x5a   : > { %p3246_p2 = pnand %p3244_p0, %p3938_p8  ;;  %p3253_p10 = por %p3252_p9, %p3251_p7 }
  0x5c   : > { %p3247_p5 = pneg %p3246_p2 }
  0x5e   : > { %p3254_p4 = pnand %p3253_p10, %p3247_p5 }
  0x60   : > { %3257 = shalt.err (!%p3254_p4)
}
  0x61   : > { %2910 = dma.hbm_to_vmem [thread:$0]  (!%p3922_p6), %s4717_s9, 128, %s3918_s30, [#allocation11]  }
  0x62   : > { %s4718_s24 = sld [smem:[#allocation43_spill]] }
  0x68   : > { %s3258_s25 = scalar_lea.hbm %s4718_s24, 128 }
  0x69   : > { %p3259_p11 = scmp.ne.s32.totalorder %s4718_s24, %s3258_s25  ;;  %p3265_p0 = scmp.lt.u32.totalorder %s3258_s25, %s4718_s24 }
  0x6b   : > { %p3261_p12 = pnand %p3259_p11, %p3938_p8 }
  0x6d   : > { %p3262_p13 = pneg %p3261_p12 }
  0x6f   : > { %p3267_p2 = pnand %p3265_p0, %p3262_p13 }
  0x71   : > { %3270 = shalt.err (!%p3267_p2)
}
  0x72   : > { %s3271_s30 = scalar_lea.vmem %s3926_s5, 128  ;;  %p3279_p10 = scmp.lt.s32.totalorder %s3926_s5, %s3926_s5 }
  0x73   : > { %p3272_p5 = scmp.ne.s32.totalorder %s3926_s5, %s3271_s30  ;;  %p3280_p4 = scmp.lt.s32.totalorder %s3271_s30, %s3271_s30 }
  0x75   : > { %p3274_p7 = pnand %p3272_p5, %p3938_p8  ;;  %p3281_p11 = por %p3280_p4, %p3279_p10 }
  0x77   : > { %p3275_p9 = pneg %p3274_p7 }
  0x79   : > { %p3282_p12 = pnand %p3281_p11, %p3275_p9 }
  0x7b   : > { %3285 = shalt.err (!%p3282_p12)
}
  0x7c   : > { %2916 = dma.hbm_to_vmem [thread:$0]  (!%p3922_p6), %s4718_s24, 128, %s3926_s5, [#allocation14]  }
  0x7d   : > { %s4719_s25 = sld [smem:[#allocation45_spill]] }
  0x83   : > { %s3286_s8 = scalar_lea.hbm %s4719_s25, 256 }
  0x84   : > { %p3287_p13 = scmp.ne.s32.totalorder %s4719_s25, %s3286_s8  ;;  %p3293_p5 = scmp.lt.u32.totalorder %s3286_s8, %s4719_s25 }
  0x86   : > { %p3289_p0 = pnand %p3287_p13, %p3938_p8 }
  0x88   : > { %p3290_p2 = pneg %p3289_p0 }
  0x8a   : > { %p3295_p7 = pnand %p3293_p5, %p3290_p2 }
  0x8c   : > { %3298 = shalt.err (!%p3295_p7)
}
  0x8d   : > { %s3299_s16 = scalar_lea.vmem %s716_s1, 256  ;;  %p3307_p11 = scmp.lt.s32.totalorder %s716_s1, %s716_s1 }
  0x8e   : > { %p3300_p9 = scmp.ne.s32.totalorder %s716_s1, %s3299_s16  ;;  %p3308_p12 = scmp.lt.s32.totalorder %s3299_s16, %s3299_s16 }
  0x90   : > { %p3302_p10 = pnand %p3300_p9, %p3938_p8  ;;  %p3309_p1 = por %p3308_p12, %p3307_p11 }
  0x92   : > { %p3303_p4 = pneg %p3302_p10 }
  0x94   : > { %p3310_p3 = pnand %p3309_p1, %p3303_p4 }
  0x96   : > { %3313 = shalt.err (!%p3310_p3)
}
  0x97   : > { %s4681_s5 = smov 128   ;;  %s4683_s17 = smov 8  }
  0x98   : > { %2922 = dma.hbm_to_vmem [thread:$0]  (!%p3922_p6), %s4719_s25, 256, %s716_s1, [#allocation17], %s4681_s5, %s4681_s5, %s4683_s17  }
  0x99   : > { %s3726_s8 = smov [#allocation19]   ;;  %s3727_s22 = smov [#allocation22]  }
  0x9a   : > { %s741_s6 = sshll.u32 %s3726_s8, 4  ;;  %s774_s4 = sshll.u32 %s3727_s22, 4  ;;  %s742_s6 = int_to_ptr.vmem [resolvable:$true] %s741_s6  ;;  %s4027_s4 = int_to_ptr.vmem [resolvable:$true] %s774_s4 }
  0x9b   : > { %s4720_s9 = sld [smem:[#allocation47_spill]] }
  0xa1   : > { %s3314_s23 = scalar_lea.hbm %s4720_s9, 256 }
  0xa2   : > { %p3315_p1 = scmp.ne.s32.totalorder %s4720_s9, %s3314_s23  ;;  %p3321_p0 = scmp.lt.u32.totalorder %s3314_s23, %s4720_s9 }
  0xa4   : > { %p3317_p3 = pnand %p3315_p1, %p3938_p8 }
  0xa6   : > { %p3318_p13 = pneg %p3317_p3 }
  0xa8   : > { %p3323_p2 = pnand %p3321_p0, %p3318_p13 }
  0xaa   : > { %3326 = shalt.err (!%p3323_p2)
}
  0xab   : > { %s3327_s21 = scalar_lea.vmem %s742_s6, 256  ;;  %p3335_p10 = scmp.lt.s32.totalorder %s742_s6, %s742_s6 }
  0xac   : > { %p3328_p5 = scmp.ne.s32.totalorder %s742_s6, %s3327_s21  ;;  %p3336_p4 = scmp.lt.s32.totalorder %s3327_s21, %s3327_s21 }
  0xae   : > { %p3330_p7 = pnand %p3328_p5, %p3938_p8  ;;  %p3337_p11 = por %p3336_p4, %p3335_p10 }
  0xb0   : > { %p3331_p9 = pneg %p3330_p7 }
  0xb2   : > { %p3338_p12 = pnand %p3337_p11, %p3331_p9 }
  0xb4   : > { %3341 = shalt.err (!%p3338_p12)
}
  0xb5   : > { %2928 = dma.hbm_to_vmem [thread:$0]  (!%p3922_p6), %s4720_s9, 256, %s742_s6, [#allocation20], %s4681_s5, %s4681_s5, %s4683_s17  }
  0xb6   : > { %s4721_s13 = sld [smem:[#allocation49_spill]] }
  0xbc   : > { %s3342_s22 = scalar_lea.hbm %s4721_s13, 128 }
  0xbd   : > { %p3343_p1 = scmp.ne.s32.totalorder %s4721_s13, %s3342_s22  ;;  %p3349_p0 = scmp.lt.u32.totalorder %s3342_s22, %s4721_s13 }
  0xbf   : > { %p3345_p3 = pnand %p3343_p1, %p3938_p8 }
  0xc1   : > { %p3346_p13 = pneg %p3345_p3 }
  0xc3   : > { %p3351_p2 = pnand %p3349_p0, %p3346_p13 }
  0xc5   : > { %3354 = shalt.err (!%p3351_p2)
}
  0xc6   : > { %s3355_s6 = scalar_lea.vmem %s4027_s4, 128  ;;  %p3363_p10 = scmp.lt.s32.totalorder %s4027_s4, %s4027_s4 }
  0xc7   : > { %p3356_p5 = scmp.ne.s32.totalorder %s4027_s4, %s3355_s6  ;;  %p3364_p4 = scmp.lt.s32.totalorder %s3355_s6, %s3355_s6 }
  0xc9   : > { %p3358_p7 = pnand %p3356_p5, %p3938_p8  ;;  %p3365_p11 = por %p3364_p4, %p3363_p10 }
  0xcb   : > { %p3359_p9 = pneg %p3358_p7 }
  0xcd   : > { %p3366_p12 = pnand %p3365_p11, %p3359_p9 }
  0xcf   : > { %3369 = shalt.err (!%p3366_p12)
}
  0xd0   : > { %2934 = dma.hbm_to_vmem [thread:$0]  (!%p3922_p6), %s4721_s13, 128, %s4027_s4, [#allocation23]  }
  0xd1   : > { %s3728_s23 = smov [#allocation25]   ;;  %s3729_s8 = smov [#allocation9]  }
  0xd2   : > { %s796_s24 = sshll.u32 %s3728_s23, 4  ;;  %s661_s22 = sshll.u32 %s3729_s8, 4  ;;  %s797_s24 = int_to_ptr.vmem [resolvable:$true] %s796_s24  ;;  %s4073_s22 = int_to_ptr.vmem [resolvable:$true] %s661_s22 }
  0xd3   : > { %s4722_s15 = sld [smem:[#allocation51_spill]] }
  0xd9   : > { %s3370_s20 = scalar_lea.hbm %s4722_s15, 128 }
  0xda   : > { %p3371_p1 = scmp.ne.s32.totalorder %s4722_s15, %s3370_s20  ;;  %p3377_p0 = scmp.lt.u32.totalorder %s3370_s20, %s4722_s15 }
  0xdc   : > { %p3373_p3 = pnand %p3371_p1, %p3938_p8 }
  0xde   : > { %p3374_p13 = pneg %p3373_p3 }
  0xe0   : > { %p3379_p2 = pnand %p3377_p0, %p3374_p13 }
  0xe2   : > { %3382 = shalt.err (!%p3379_p2)
}
  0xe3   : > { %s3383_s18 = scalar_lea.vmem %s797_s24, 128  ;;  %p3391_p10 = scmp.lt.s32.totalorder %s797_s24, %s797_s24 }
  0xe4   : > { %p3384_p5 = scmp.ne.s32.totalorder %s797_s24, %s3383_s18  ;;  %p3392_p4 = scmp.lt.s32.totalorder %s3383_s18, %s3383_s18 }
  0xe6   : > { %p3386_p7 = pnand %p3384_p5, %p3938_p8  ;;  %p3393_p11 = por %p3392_p4, %p3391_p10 }
  0xe8   : > { %p3387_p9 = pneg %p3386_p7 }
  0xea   : > { %p3394_p12 = pnand %p3393_p11, %p3387_p9 }
  0xec   : > { %3397 = shalt.err (!%p3394_p12)
}
  0xed   : > { %2940 = dma.hbm_to_vmem [thread:$0]  (!%p3922_p6), %s4722_s15, 128, %s797_s24, [#allocation26]  }
  0xee   : > { %s4723_s20 = sld [smem:[#allocation40_spill]] }
  0xf4   : > { %s3398_s1 = scalar_lea.hbm %s4723_s20, 128 }
  0xf5   : > { %p3399_p1 = scmp.ne.s32.totalorder %s4723_s20, %s3398_s1  ;;  %p3405_p0 = scmp.lt.u32.totalorder %s3398_s1, %s4723_s20 }
  0xf7   : > { %p3401_p3 = pnand %p3399_p1, %p3938_p8 }
  0xf9   : > { %p3402_p13 = pneg %p3401_p3 }
  0xfb   : > { %p3407_p2 = pnand %p3405_p0, %p3402_p13 }
  0xfd   : > { %3410 = shalt.err (!%p3407_p2)
}
  0xfe   : > { %s3411_s24 = scalar_lea.vmem %s4073_s22, 128  ;;  %p3419_p10 = scmp.lt.s32.totalorder %s4073_s22, %s4073_s22 }
  0xff   : > { %p3412_p5 = scmp.ne.s32.totalorder %s4073_s22, %s3411_s24  ;;  %p3420_p4 = scmp.lt.s32.totalorder %s3411_s24, %s3411_s24 }
 0x101   : > { %p3414_p7 = pnand %p3412_p5, %p3938_p8  ;;  %p3421_p11 = por %p3420_p4, %p3419_p10 }
 0x103   : > { %p3415_p9 = pneg %p3414_p7 }
 0x105   : > { %p3422_p12 = pnand %p3421_p11, %p3415_p9 }
 0x107   : > { %3425 = shalt.err (!%p3422_p12)
}
 0x108   : > { %2907 = dma.hbm_to_vmem [thread:$0]  (!%p3922_p6), %s4723_s20, 128, %s4073_s22, [#allocation8]  }
 0x109   : > { %s3730_s30 = smov [#allocation12]   ;;  %s3731_s1 = smov [#allocation15]  }
 0x10a   : > { %s683_s16 = sshll.u32 %s3730_s30, 4  ;;  %s705_s6 = sshll.u32 %s3731_s1, 4  ;;  %s684_s16 = int_to_ptr.vmem [resolvable:$true] %s683_s16  ;;  %s4116_s6 = int_to_ptr.vmem [resolvable:$true] %s705_s6 }
 0x10b   : > { %s4724_s18 = sld [smem:[#allocation42_spill]] }
 0x111   : > { %s3426_s24 = scalar_lea.hbm %s4724_s18, 128 }
 0x112   : > { %p3427_p1 = scmp.ne.s32.totalorder %s4724_s18, %s3426_s24  ;;  %p3433_p0 = scmp.lt.u32.totalorder %s3426_s24, %s4724_s18 }
 0x114   : > { %p3429_p3 = pnand %p3427_p1, %p3938_p8 }
 0x116   : > { %p3430_p13 = pneg %p3429_p3 }
 0x118   : > { %p3435_p2 = pnand %p3433_p0, %p3430_p13 }
 0x11a   : > { %3438 = shalt.err (!%p3435_p2)
}
 0x11b   : > { %s3439_s8 = scalar_lea.vmem %s684_s16, 128  ;;  %p3447_p10 = scmp.lt.s32.totalorder %s684_s16, %s684_s16 }
 0x11c   : > { %p3440_p5 = scmp.ne.s32.totalorder %s684_s16, %s3439_s8  ;;  %p3448_p4 = scmp.lt.s32.totalorder %s3439_s8, %s3439_s8 }
 0x11e   : > { %p3442_p7 = pnand %p3440_p5, %p3938_p8  ;;  %p3449_p11 = por %p3448_p4, %p3447_p10 }
 0x120   : > { %p3443_p9 = pneg %p3442_p7 }
 0x122   : > { %p3450_p12 = pnand %p3449_p11, %p3443_p9 }
 0x124   : > { %3453 = shalt.err (!%p3450_p12)
}
 0x125   : > { %2913 = dma.hbm_to_vmem [thread:$0]  (!%p3922_p6), %s4724_s18, 128, %s684_s16, [#allocation11]  }
 0x126   : > { %s4725_s21 = sld [smem:[#allocation44_spill]] }
 0x12c   : > { %s3454_s4 = scalar_lea.hbm %s4725_s21, 128 }
 0x12d   : > { %p3455_p1 = scmp.ne.s32.totalorder %s4725_s21, %s3454_s4  ;;  %p3461_p0 = scmp.lt.u32.totalorder %s3454_s4, %s4725_s21 }
 0x12f   : > { %p3457_p3 = pnand %p3455_p1, %p3938_p8 }
 0x131   : > { %p3458_p13 = pneg %p3457_p3 }
 0x133   : > { %p3463_p2 = pnand %p3461_p0, %p3458_p13 }
 0x135   : > { %3466 = shalt.err (!%p3463_p2)
}
 0x136   : > { %s3467_s16 = scalar_lea.vmem %s4116_s6, 128  ;;  %p3475_p10 = scmp.lt.s32.totalorder %s4116_s6, %s4116_s6 }
 0x137   : > { %p3468_p5 = scmp.ne.s32.totalorder %s4116_s6, %s3467_s16  ;;  %p3476_p4 = scmp.lt.s32.totalorder %s3467_s16, %s3467_s16 }
 0x139   : > { %p3470_p7 = pnand %p3468_p5, %p3938_p8  ;;  %p3477_p11 = por %p3476_p4, %p3475_p10 }
 0x13b   : > { %p3471_p9 = pneg %p3470_p7 }
 0x13d   : > { %p3478_p12 = pnand %p3477_p11, %p3471_p9 }
 0x13f   : > { %3481 = shalt.err (!%p3478_p12)
}
 0x140   : > { %2919 = dma.hbm_to_vmem [thread:$0]  (!%p3922_p6), %s4725_s21, 128, %s4116_s6, [#allocation14]  }
 0x141   : > { %s3732_s30 = smov [#allocation18]   ;;  %s3733_s4 = smov [#allocation21]  }
 0x142   : > { %s728_s1 = sshll.u32 %s3732_s30, 4  ;;  %s754_s24 = sshll.u32 %s3733_s4, 4  ;;  %s729_s1 = int_to_ptr.vmem [resolvable:$true] %s728_s1  ;;  %s4159_s24 = int_to_ptr.vmem [resolvable:$true] %s754_s24 }
 0x143   : > { %s4726_s8 = sld [smem:[#allocation46_spill]] }
 0x149   : > { %s3482_s16 = scalar_lea.hbm %s4726_s8, 256 }
 0x14a   : > { %p3483_p1 = scmp.ne.s32.totalorder %s4726_s8, %s3482_s16  ;;  %p3489_p0 = scmp.lt.u32.totalorder %s3482_s16, %s4726_s8 }
 0x14c   : > { %p3485_p3 = pnand %p3483_p1, %p3938_p8 }
 0x14e   : > { %p3486_p13 = pneg %p3485_p3 }
 0x150   : > { %p3491_p2 = pnand %p3489_p0, %p3486_p13 }
 0x152   : > { %3494 = shalt.err (!%p3491_p2)
}
 0x153   : > { %s3495_s17 = scalar_lea.vmem %s729_s1, 256  ;;  %p3503_p10 = scmp.lt.s32.totalorder %s729_s1, %s729_s1 }
 0x154   : > { %p3496_p5 = scmp.ne.s32.totalorder %s729_s1, %s3495_s17  ;;  %p3504_p4 = scmp.lt.s32.totalorder %s3495_s17, %s3495_s17 }
 0x156   : > { %p3498_p7 = pnand %p3496_p5, %p3938_p8  ;;  %p3505_p11 = por %p3504_p4, %p3503_p10 }
 0x158   : > { %p3499_p9 = pneg %p3498_p7 }
 0x15a   : > { %p3506_p12 = pnand %p3505_p11, %p3499_p9 }
 0x15c   : > { %3509 = shalt.err (!%p3506_p12)
}
 0x15d   : > { %s4727_s13 = smov 8   ;;  %s4728_s9 = smov 128  }
 0x15e   : > { %2925 = dma.hbm_to_vmem [thread:$0]  (!%p3922_p6), %s4726_s8, 256, %s729_s1, [#allocation17], %s4728_s9, %s4728_s9, %s4727_s13  }
 0x15f   : > { %s4729_s16 = sld [smem:[#allocation48_spill]] }
 0x165   : > { %s3510_s5 = scalar_lea.hbm %s4729_s16, 256 }
 0x166   : > { %p3511_p1 = scmp.ne.s32.totalorder %s4729_s16, %s3510_s5  ;;  %p3517_p0 = scmp.lt.u32.totalorder %s3510_s5, %s4729_s16 }
 0x168   : > { %p3513_p3 = pnand %p3511_p1, %p3938_p8 }
 0x16a   : > { %p3514_p13 = pneg %p3513_p3 }
 0x16c   : > { %p3519_p2 = pnand %p3517_p0, %p3514_p13 }
 0x16e   : > { %3522 = shalt.err (!%p3519_p2)
}
 0x16f   : > { %s3523_s1 = scalar_lea.vmem %s4159_s24, 256  ;;  %p3531_p10 = scmp.lt.s32.totalorder %s4159_s24, %s4159_s24 }
 0x170   : > { %p3524_p5 = scmp.ne.s32.totalorder %s4159_s24, %s3523_s1  ;;  %p3532_p4 = scmp.lt.s32.totalorder %s3523_s1, %s3523_s1 }
 0x172   : > { %p3526_p7 = pnand %p3524_p5, %p3938_p8  ;;  %p3533_p11 = por %p3532_p4, %p3531_p10 }
 0x174   : > { %p3527_p9 = pneg %p3526_p7 }
 0x176   : > { %p3534_p12 = pnand %p3533_p11, %p3527_p9 }
 0x178   : > { %3537 = shalt.err (!%p3534_p12)
}
 0x179   : > { %2931 = dma.hbm_to_vmem [thread:$0]  (!%p3922_p6), %s4729_s16, 256, %s4159_s24, [#allocation20], %s4728_s9, %s4728_s9, %s4727_s13  }
 0x17a   : > { %s3734_s30 = smov [#allocation24]   ;;  %s3735_s23 = smov [#allocation27]  }
 0x17b   : > { %s785_s4 = sshll.u32 %s3734_s30, 4  ;;  %s816_s22 = sshll.u32 %s3735_s23, 4  ;;  %s786_s4 = int_to_ptr.vmem [resolvable:$true] %s785_s4  ;;  %s4208_s22 = int_to_ptr.vmem [resolvable:$true] %s816_s22 }
 0x17c   : > { %s4730_s14 = sld [smem:[#allocation50_spill]] }
 0x182   : > { %s3538_s17 = scalar_lea.hbm %s4730_s14, 128 }
 0x183   : > { %p3539_p1 = scmp.ne.s32.totalorder %s4730_s14, %s3538_s17  ;;  %p3545_p0 = scmp.lt.u32.totalorder %s3538_s17, %s4730_s14 }
 0x185   : > { %p3541_p3 = pnand %p3539_p1, %p3938_p8 }
 0x187   : > { %p3542_p13 = pneg %p3541_p3 }
 0x189   : > { %p3547_p2 = pnand %p3545_p0, %p3542_p13 }
 0x18b   : > { %3550 = shalt.err (!%p3547_p2)
}
 0x18c   : > { %s3551_s13 = scalar_lea.vmem %s786_s4, 128  ;;  %p3559_p10 = scmp.lt.s32.totalorder %s786_s4, %s786_s4 }
 0x18d   : > { %p3552_p5 = scmp.ne.s32.totalorder %s786_s4, %s3551_s13  ;;  %p3560_p4 = scmp.lt.s32.totalorder %s3551_s13, %s3551_s13 }
 0x18f   : > { %p3554_p7 = pnand %p3552_p5, %p3938_p8  ;;  %p3561_p11 = por %p3560_p4, %p3559_p10 }
 0x191   : > { %p3555_p9 = pneg %p3554_p7 }
 0x193   : > { %p3562_p12 = pnand %p3561_p11, %p3555_p9 }
 0x195   : > { %3565 = shalt.err (!%p3562_p12)
}
 0x196   : > { %2937 = dma.hbm_to_vmem [thread:$0]  (!%p3922_p6), %s4730_s14, 128, %s786_s4, [#allocation23]  }
 0x197   : > { %s3566_s23 = scalar_lea.hbm %s4656_s19, 64 }
 0x198   : > { %p3567_p1 = scmp.ne.s32.totalorder %s4656_s19, %s3566_s23  ;;  %p3573_p0 = scmp.lt.u32.totalorder %s3566_s23, %s4656_s19 }
 0x19a   : > { %p3569_p3 = pnand %p3567_p1, %p3938_p8 }
 0x19c   : > { %p3570_p13 = pneg %p3569_p3 }
 0x19e   : > { %p3575_p2 = pnand %p3573_p0, %p3570_p13 }
 0x1a0   : > { %3578 = shalt.err (!%p3575_p2)
}
 0x1a1   : > { %s3579_s4 = scalar_lea.vmem %s4208_s22, 64  ;;  %p3587_p10 = scmp.lt.s32.totalorder %s4208_s22, %s4208_s22 }
 0x1a2   : > { %p3580_p5 = scmp.ne.s32.totalorder %s4208_s22, %s3579_s4  ;;  %p3588_p4 = scmp.lt.s32.totalorder %s3579_s4, %s3579_s4 }
 0x1a4   : > { %p3582_p7 = pnand %p3580_p5, %p3938_p8  ;;  %p3589_p11 = por %p3588_p4, %p3587_p10 }
 0x1a6   : > { %p3583_p9 = pneg %p3582_p7 }
 0x1a8   : > { %p3590_p12 = pnand %p3589_p11, %p3583_p9 }
 0x1aa   : > { %3593 = shalt.err (!%p3590_p12)
}
 0x1ab   : > { %2943 = dma.hbm_to_vmem [thread:$0]  (!%p3922_p6), %s4656_s19, 64, %s4208_s22, [#allocation26]  }
 0x1ac   : > { %s2585_s10 = sadd.s32 4294967294, %s3718_s28   ;;  %s4253_s2 = sadd.s32 1, %s3718_s28  }
 0x1ad   : > { %s54_s13 = ssub.s32 %s3718_s28, %s4253_s2  ;;  %s57_s8 = sadd.s32 1, %s3714_s7 }
 0x1ae   : > { %p55_p8 = scmp.eq.s32.totalorder %s54_s13, 0  ;;  %p64_p1 = scmp.ne.s32.totalorder %s3714_s7, %s3710_s3 }
 0x1af   : > { %p65_p3 = scmp.eq.s32.totalorder %s3718_s28, 0  ;;  %p70_p13 = scmp.ne.s32.totalorder %s3710_s3, %s3706_s27 }
 0x1b0   : > { %s4264_s9 = scalar_select %p55_p8, %s3714_s7, %s57_s8  }
 0x1b1   : > { %p4266_p0 = por %p65_p3, %p64_p1  ;;  %p4732_p2 = scmp.eq.s32.totalorder %s3904_s29, 0 }
 0x1b2   : > { %p598_p5 = scmp.eq.s32.totalorder %s3904_s29, 1  ;;  %p604_p7 = scmp.eq.s32.totalorder %s2585_s10, 1 }
 0x1b3   : > { %p4272_p6 = por %p4732_p2, %p70_p13  ;;  %p2966_p9 = scmp.lt.s32.totalorder %s3718_s28, 2 }
 0x1b4   : > { %s842_s30 = sand.u32 1, %s3714_s7   ;;  %p4279_p10 = por %p598_p5, %p64_p1 }
 0x1b5   : > { %p4283_p4 = por %p604_p7, %p70_p13  ;;  %s2602_s6 = sshll.u32 %s842_s30, 2 }
 0x1b6   : > { %s4734_s23 = scalar_select %p4279_p10, 1, 0 }
 0x1b7   : > { %s4735_s5 = scalar_select %p4283_p4, 1, 0 }
 0x1b8   : > { %s2603_s17 = sshll.u32 %s3718_s28, 6  ;;  %s4736_s15 = sld [smem:[#allocation38_spill]] }
 0x1b9   : > { %s846_s10 = scalar_lea.vmem [#allocation4], %s2602_s6  ;;  %p4297_p11 = pnand %p2966_p9, %p4266_p0 }
 0x1ba   : > { %s853_s13 = sshll.u32 %s846_s10, 4  ;;  %s843_s14 = scalar_lea.sflag [#allocation5], %s842_s30  ;;  %s4293_s13 = int_to_ptr.vmem [resolvable:$true] %s853_s13 }
 0x1bb   : > { %p3596_p8 = pneg %p4297_p11 }
 0x1be   : > { %s4291_s24 = scalar_lea.hbm %s4736_s15, %s2603_s17  ;;  %s3599_s1 = scalar_lea.hbm %s4736_s15, 128 }
 0x1bf   : > { %s3594_s16 = scalar_lea.hbm %s4291_s24, 64  ;;  %p3600_p13 = scmp.lt.u32.totalorder %s4291_s24, %s4736_s15 }
 0x1c0   : > { %p3595_p12 = scmp.ne.s32.totalorder %s4291_s24, %s3594_s16  ;;  %p3601_p0 = scmp.lt.u32.totalorder %s3599_s1, %s3594_s16 }
 0x1c1   : > { %p3603_p5 = scmp.lt.u32.totalorder %s3594_s16, %s4291_s24 }
 0x1c2   : > { %p3597_p1 = pnand %p3596_p8, %p3595_p12  ;;  %p3602_p2 = por %p3601_p0, %p3600_p13 }
 0x1c4   : > { %p3598_p3 = pneg %p3597_p1  ;;  %p3604_p7 = por %p3603_p5, %p3602_p2 }
 0x1c6   : > { %p3605_p9 = pnand %p3604_p7, %p3598_p3 }
 0x1c8   : > { %3608 = shalt.err (!%p3605_p9)
}
 0x1c9   : > { %s3609_s30 = scalar_lea.vmem %s4293_s13, 64  ;;  %s3736_s10 = smov [#allocation4]  }
 0x1ca   : > { %p3610_p12 = scmp.ne.s32.totalorder %s4293_s13, %s3609_s30  ;;  %s3614_s6 = sshll.u32 %s3736_s10, 4  ;;  %s3615_s6 = int_to_ptr.vmem [resolvable:$false] %s3614_s6 }
 0x1cb   : > { %s3616_s17 = scalar_lea.vmem %s3615_s6, 128  ;;  %p3617_p10 = scmp.lt.s32.totalorder %s4293_s13, %s3615_s6 }
 0x1cc   : > { %p3612_p1 = pnand %p3610_p12, %p3596_p8  ;;  %p3618_p13 = scmp.lt.s32.totalorder %s3616_s17, %s3609_s30 }
 0x1ce   : > { %p3613_p4 = pneg %p3612_p1  ;;  %p3619_p0 = por %p3618_p13, %p3617_p10 }
 0x1d0   : > { %p3620_p2 = pnand %p3619_p0, %p3613_p4 }
 0x1d2   : > { %3623 = shalt.err (!%p3620_p2)
}
 0x1d3   : > { %2947 = dma.hbm_to_vmem [thread:$0]  (!%p4297_p11), %s4291_s24, 64, %s4293_s13, %s843_s14  }
 0x1d4   : > { %p4738_p3 = scmp.ne.s32.totalorder %s4713_s0, 0 }
 0x1d5   : > { %s4329_s16 = sand.u32 (!%p4738_p3), 1, %s3710_s3  }
 0x1d6   : > { %862 = sbr.rel (%p4738_p3) target bundleno = 4317 (0x10dd), region = 120  ;;  %s2605_s1 = sshll.u32 (!%p4738_p3), %s4329_s16, 2 }
 0x1d7   : > { %s865_s18 = scalar_lea.sflag (!%p4738_p3), [#allocation5], %s4329_s16  ;;  %s868_s4 = scalar_lea.vmem (!%p4738_p3), [#allocation4], %s2605_s1 }
 0x1dd   : > { %3669 = dma.done.wait (%p4272_p6), %s865_s18, 64  }
 0x1de   : > { %3671 = vsyncadd (%p4272_p6), %s865_s18, 4294967232  ;;  %p4739_p10 = scmp.eq.s32.totalorder %s3904_s29, 0 }
 0x1e0   : > { %3673 = dma.done.wait (%p4739_p10), [#allocation8], 256   ;;  %p4740_p4 = pmov %p4739_p10 }
 0x1e2   : > { %3675 = vsyncadd (%p4740_p4), [#allocation8], 4294967040  ;;  %p4741_p11 = pmov %p4740_p4 }
 0x1e3   : > { %p4742_p8 = pmov %p4740_p4 }
 0x1e4   : > { %3677 = dma.done.wait (%p4741_p11), [#allocation11], 256  }
 0x1e5   : > { %3679 = vsyncadd (%p4742_p8), [#allocation11], 4294967040  ;;  %p4743_p5 = pmov %p4740_p4 }
 0x1e6   : > { %p4744_p7 = pmov %p4740_p4 }
 0x1e7   : > { %3681 = dma.done.wait (%p4743_p5), [#allocation14], 256  }
 0x1e8   : > { %3683 = vsyncadd (%p4744_p7), [#allocation14], 4294967040  ;;  %p4745_p6 = pmov %p4740_p4 }
 0x1e9   : > { %p4746_p9 = pmov %p4740_p4 }
 0x1ea   : > { %3685 = dma.done.wait (%p4745_p6), [#allocation17], 512  }
 0x1eb   : > { %3687 = vsyncadd (%p4746_p9), [#allocation17], 4294966784  ;;  %p4747_p12 = pmov %p4740_p4 }
 0x1ec   : > { %p4748_p1 = pmov %p4740_p4 }
 0x1ed   : > { %3689 = dma.done.wait (%p4747_p12), [#allocation20], 512  }
 0x1ee   : > { %3691 = vsyncadd (%p4748_p1), [#allocation20], 4294966784  ;;  %p4749_p13 = pmov %p4748_p1 }
 0x1ef   : > { %p4750_p0 = pmov %p4748_p1 }
 0x1f0   : > { %3693 = dma.done.wait (%p4749_p13), [#allocation23], 256  }
 0x1f1   : > { %3695 = vsyncadd (%p4750_p0), [#allocation23], 4294967040  ;;  %p4751_p2 = pmov %p4750_p0 }
 0x1f2   : > { %p4752_p3 = pmov %p4750_p0 }
 0x1f3   : > { %3697 = dma.done.wait (%p4751_p2), [#allocation26], 192  }
 0x1f4   : > { %3699 = vsyncadd (%p4752_p3), [#allocation26], 4294967104  ;;  %vm1004_vm0 = vcmask 130048   ;;  %v3737_v0 = vmov 0.0   ;;  %vm1013_vm1 = vcmask 125952   ;;  %s3738_s14 = smov 127  }
 0x1f5   : > { %1003 = vst [vmem:[#allocation2] sm:$0xff] %v3737_v0  ;;  %1005 = vst.msk [vmem:[#allocation2 + $0x8] sm:$0xff] %vm1004_vm0, %v3737_v0  ;;  %v1012_v1 = vld [vmem:[%s868_s4] sm:$0xf]  ;;  %s3739_s0 = smov 126   ;;  %v3740_v7 = vmov 0.0|0.0  }
 0x1f6   : > { %1007 = vst.msk [vmem:[#allocation2 + $0x18] sm:$0xff] %vm1004_vm0, %v3737_v0  ;;  %1008 = vst [vmem:[#allocation3] sm:$0xff] %v3737_v0  ;;  %2796 = vmatprep.subr.bf16.mxu0 %v3740_v7  ;;  %2800 = vmatprep.subr.bf16.mxu1 %v3740_v7  ;;  %vm1025_vm2 = vcmask 1039360   ;;  %vm1031_vm3 = vcmask 1043456   ;;  %vm3741_vm4 = vmmov 0   ;;  %v1035_v13 = vld [vmem:[#allocation9] sm:$0xff] }
 0x1f7   : > { %1009 = vst.msk [vmem:[#allocation3 + $0x8] sm:$0xff] %vm1004_vm0, %v3737_v0  ;;  %1011 = vst.msk [vmem:[#allocation3 + $0x18] sm:$0xff] %vm1004_vm0, %v3737_v0  ;;  %2698 = vmatprep.mubr.msk.f32.mxu0 %vm3741_vm4, %v3737_v0  ;;  %2707 = vmatprep.mubr.msk.f32.mxu1 %vm3741_vm4, %v3737_v0  ;;  %v3742_v15 = vmov 0   ;;  %s3743_s22 = smov 2   ;;  %vm1049_vm5 = vcmask 15360   ;;  %vm3744_vm6 = vmmov 1  }
 0x1f8   : > { %1014 = vst.msk [vmem:[#allocation2 + $0x8] sm:$0xf] %vm1013_vm1, %v1012_v1  ;;  %3050 = vset.pattern.permute.xlu0 %v3742_v15  ;;  %3066 = vset.pattern.permute.xlu1 %v3742_v15  ;;  %vm4393_vm7 = vmpackc.low %vm1031_vm3, %vm3744_vm6  ;;  %v1034_v25 = vld [vmem:[#allocation7] sm:$0xff]  ;;  %vm1052_vm8 = vcmask 97280   ;;  %vm1246_vm9 = vcmask 31744   ;;  %v1240_v41 = vld [vmem:[#allocation15] sm:$0xff] }
 0x1f9   : > { %v1239_v27 = vld [vmem:[#allocation13] sm:$0xff]  ;;  %v1142_v43 = vld [vmem:[#allocation12] sm:$0xff]  ;;  %v1141_v54 = vld [vmem:[#allocation10] sm:$0xff]  ;;  %vm1163_vm10 = vcmask 195584   ;;  %s3745_s24 = smov 124   ;;  %s3746_s13 = smov 4  }
 0x1fa   : > { %vm1334_vm11 = vcmask 1031168   ;;  %vm1617_vm12 = vcmask 64512   ;;  %vm1518_vm13 = vcmask 392192   ;;  %p998_p10 = scmp.lt.s32.totalorder %s3904_s29, 1  ;;  %s4756_s6 = sld [smem:[#allocation52_spill]] }
 0x1fb   : > { %s4761_s4 = sld [smem:[#allocation56_spill]]  ;;  %p4764_p11 = scmp.ne.s32.totalorder %s4734_s23, 0 }
 0x1fc   : > { %v1015_v2 = vld [vmem:[#allocation2] sm:$0xf]  ;;  %s999_s30 = scalar_select %p998_p10, %s3904_s29, 1 }
 0x1fd   : > { %v1019_v3 = vrot.slane %v1015_v2, 4 }
 0x1fe   : > { %s2645_s10 = sshll.u32 %s999_s30, 4  ;;  %s4755_s30 = sld [smem:[#allocation54_spill]] }
 0x1ff   : > { %v1016_v4 = vld [vmem:[#allocation2 + $0x8] sm:$0xf]  ;;  %s1002_s18 = scalar_lea.vmem %s4663_s26, %s2645_s10  ;;  %s2642_s10 = sshll.u32 %s3904_s29, 6 }
 0x200   : > { %v1020_v5 = vrot.slane %v1016_v4, 4  ;;  %v1238_v26 = vld [vmem:[#allocation2 + $0x8] sm:$0xf]  ;;  %s3747_s29 = smov [#allocation28]  }
 0x202   : > { %v3040_v6 = vpack.i.bf16 %v1020_v5, %v1019_v3 }
 0x204   : > { %3041 = vrot.lane.b32.xlu0 %v3040_v6, %s3738_s14  ;;  %v1341_v6 = vld [vmem:[#allocation18 + $0x8] sm:$0xff] }
 0x208   : > { %1029 = vrot.lane.b32.xlu0 %v1016_v4, %s3739_s0 }
 0x20c   : > { %1038 = vperm.xlu0 %3050, %v1035_v13   ;;  %v1340_v13 = vld [vmem:[#allocation18] sm:$0xff] }
 0x276   : > { %v3042_v8 = vpop.permute.xlu0 %3041 }
 0x277   : > { %v3044_v9 = vunpack.i.h.bf16 %v3042_v8  ;;  %v3043_v10 = vunpack.i.l.bf16 %v3042_v8 }
 0x279   : > { %v1026_v11 = vsel %vm1025_vm2, %v3043_v10, %v3044_v9  ;;  %v1033_v12 = vsel %vm1031_vm3, %v1016_v4, %v3044_v9  ;;  %v1338_v10 = vld [vmem:[#allocation16] sm:$0xff] }
 0x27a   : > { %v1032_v14 = vsel %vm1031_vm3, %v1015_v2, %v1026_v11  ;;  %v1030_v17 = vpop.permute.xlu0 %1029 }
 0x27b   : > { %v3045_v16 = vpack.i.bf16 %v1033_v12, %v1032_v14 }
 0x27d   : > { %3046 = vrot.lane.b32.xlu1 %v3045_v16, %s3743_s22 }
 0x281   : > { %1047 = vrot.lane.b32.xlu1 %v1030_v17, %s3743_s22 }
 0x28b   : > { %v1039_v28 = vpop.permute.xlu0 %1038 }
 0x2ef   : > { %v3047_v18 = vpop.permute.xlu1 %3046 }
 0x2f0   : > { %v3049_v19 = vunpack.i.h.bf16 %v3047_v18  ;;  %v3048_v20 = vunpack.i.l.bf16 %v3047_v18 }
 0x2f2   : > { %v1050_v21 = vsel %vm1049_vm5, %v3048_v20, %v3049_v19 }
 0x2f3   : > { %v1048_v22 = vpop.permute.xlu1 %1047 }
 0x2f4   : > { %v2797_v24 = vpack.c.bf16 %v1048_v22, %v1050_v21 }
 0x2f6   : > { %2799 = vmatpush3.bf16.msk.msra.mxu0 %vm4393_vm7, %v2797_v24 }
 0x2f7   : > { %2710 = vmatprep.subr.mxu0 %v3737_v0 }
 0x2f9   : > { %2699 = vmatmul.mubr.msk.f32.vlgmr.msra.gmra.mrb[0].mxu0 %vm1052_vm8, %v1034_v25  ;;  %v1339_v25 = vld [vmem:[#allocation16 + $0x8] sm:$0xff] }
 0x2fa   : > { %2712 = vmatprep.mubr.msk.f32.mxu0 %vm3741_vm4, %v3737_v0  ;;  %2711 = vmatpush3.msk.msra.mxu0 %vm1031_vm3, %v1238_v26  ;;  %v1603_v26 = vld [vmem:[%s4648_s11] sm:$0xff] }
 0x2fd   : > { %2713 = vmatmul.mubr.msk.f32.vlgmr.msra.gmra.mrb[2].mxu0 %vm1246_vm9, %v1239_v27  ;;  %v1604_v27 = vld [vmem:[%s4648_s11 + $0x8] sm:$0xff] }
 0x3cc   : > { %v1124_v29 = vpop.f32.mrb[0].mxu0 }
 0x3cd   : > { %v1125_v30 = vadd.f32 %v1124_v29, %v1039_v28  ;;  %v2700_v31 = vpop.f32.mrb[1].mxu0 }
 0x3cf   : > { %v1128_v32 = vmax.f32 %v1125_v30, 0.0 }
 0x3d0   : > { %v1319_v42 = vpop.f32.mrb[2].mxu0 }
 0x3d1   : > { %1129 = vst.msk [vmem:[#allocation3 + $0x8] sm:$0xff] %vm1004_vm0, %v1128_v32  ;;  %v2714_v44 = vpop.f32.mrb[3].mxu0 }
 0x3d8   : > { %v1131_v33 = vld [vmem:[#allocation3 + $0x8] sm:$0xff] }
 0x3d9   : > { %v3056_v34 = vpack.i.bf16 %v1131_v33, %v3737_v0 }
 0x3db   : > { %3057 = vrot.lane.b32.xlu0 %v3056_v34, %s3743_s22  ;;  %3052 = vrot.lane.b32.xlu1 %v3056_v34, %s3738_s14 }
 0x3df   : > { %1139 = vrot.lane.b32.xlu1 %v1131_v33, %s3739_s0 }
 0x44d   : > { %v3053_v35 = vpop.permute.xlu1 %3052  ;;  %v3058_v45 = vpop.permute.xlu0 %3057 }
 0x44e   : > { %v3055_v36 = vunpack.i.h.bf16 %v3053_v35  ;;  %v3054_v37 = vunpack.i.l.bf16 %v3053_v35  ;;  %v3060_v46 = vunpack.i.h.bf16 %v3058_v45  ;;  %v3059_v47 = vunpack.i.l.bf16 %v3058_v45 }
 0x450   : > { %v1138_v38 = vsel %vm1025_vm2, %v3054_v37, %v3055_v36  ;;  %v1158_v51 = vsel %vm1049_vm5, %v3059_v47, %v3060_v46 }
 0x451   : > { %v3061_v39 = vpack.i.bf16 %v3055_v36, %v1138_v38  ;;  %v1140_v40 = vpop.permute.xlu1 %1139 }
 0x452   : > { %1156 = vrot.lane.b32.xlu0 %v1140_v40, %s3743_s22 }
 0x453   : > { %3062 = vrot.lane.b32.xlu1 %v3061_v39, %s3743_s22 }
 0x456   : > { %1243 = vperm.xlu0 %3050, %v1240_v41  }
 0x457   : > { %1145 = vperm.xlu1 %3066, %v1142_v43  }
 0x4c4   : > { %v1157_v55 = vpop.permute.xlu0 %1156 }
 0x4c5   : > { %v3063_v48 = vpop.permute.xlu1 %3062 }
 0x4c6   : > { %v3065_v49 = vunpack.i.h.bf16 %v3063_v48  ;;  %v3064_v50 = vunpack.i.l.bf16 %v3063_v48 }
 0x4c8   : > { %v1159_v52 = vsel %vm1049_vm5, %v3064_v50, %v3065_v49  ;;  %v1474_v50 = vld [vmem:[#allocation19] sm:$0xff] }
 0x4c9   : > { %v2801_v53 = vpack.c.bf16 %v1159_v52, %v1158_v51  ;;  %2736 = vmatprep.mubr.msk.f32.mxu0 %vm1518_vm13, %v1474_v50 }
 0x4cb   : > { %2802 = vmatpush3.bf16.msra.mxu1 %v2801_v53 }
 0x4cc   : > { %2705 = vmatprep.subr.mxu1 %v3737_v0 }
 0x4cf   : > { %2706 = vmatpush3.msra.mxu1 %v1157_v55 }
 0x4d0   : > { %2708 = vmatmul.mubr.msk.f32.vlgmr.msra.gmra.mrb[0].mxu1 %vm1163_vm10, %v1141_v54  ;;  %v1476_v54 = vld [vmem:[#allocation21] sm:$0xff] }
 0x4d1   : > { %2721 = vmatprep.mubr.msk.f32.mxu1 %vm1163_vm10, %v1338_v10 }
 0x4d5   : > { %v1244_v57 = vpop.permute.xlu0 %1243 }
 0x4d6   : > { %v1146_v56 = vpop.permute.xlu1 %1145  ;;  %v1320_v61 = vadd.f32 %v1319_v42, %v1244_v57 }
 0x5a3   : > { %v1233_v58 = vpop.f32.mrb[0].mxu1 }
 0x5a4   : > { %v1234_v59 = vadd.f32 %v1233_v58, %v1146_v56  ;;  %v2709_v60 = vpop.f32.mrb[1].mxu1 }
 0x5a6   : > { %v1237_v62 = vmax.f32 %v1234_v59, 0.0 }
 0x5a8   : > { %v1323_v63 = vadd.f32 %v1320_v61, %v1237_v62  ;;  %v1605_v62 = vld [vmem:[%s4649_s12] sm:$0xff] }
 0x5aa   : > { %v1324_v1 = vmax.f32 %v1323_v63, 0.0 }
 0x5ac   : > { %1325 = vst.msk [vmem:[#allocation2 + $0x8] sm:$0xff] %vm1004_vm0, %v1324_v1 }
 0x5b3   : > { %v1327_v2 = vld [vmem:[#allocation2 + $0x8] sm:$0xff] }
 0x5b4   : > { %1336 = vrot.lane.b32.xlu0 %v1327_v2, %s3745_s24  ;;  %v3067_v3 = vpack.i.bf16 %v1327_v2, %v3737_v0 }
 0x5b6   : > { %3068 = vrot.lane.b32.xlu1 %v3067_v3, %s3739_s0 }
 0x5ba   : > { %3073 = vrot.lane.b32.xlu1 %v3067_v3, %s3746_s13 }
 0x626   : > { %v1337_v4 = vpop.permute.xlu0 %1336 }
 0x627   : > { %1360 = vrot.lane.b32.xlu1 %v1337_v4, %s3746_s13  ;;  %v1606_v4 = vld [vmem:[%s4649_s12 + $0x8] sm:$0xff] }
 0x628   : > { %v3069_v5 = vpop.permute.xlu1 %3068 }
 0x629   : > { %v3071_v8 = vunpack.i.h.bf16 %v3069_v5  ;;  %v3070_v9 = vunpack.i.l.bf16 %v3069_v5 }
 0x62b   : > { %v1335_v11 = vsel %vm1334_vm11, %v3070_v9, %v3071_v8  ;;  %1349 = vperm.xlu1 %3066, %v1341_v6  }
 0x62c   : > { %v3077_v12 = vpack.i.bf16 %v3071_v8, %v1335_v11  ;;  %v3074_v14 = vpop.permute.xlu1 %3073 }
 0x62d   : > { %v3076_v15 = vunpack.i.h.bf16 %v3074_v14  ;;  %v3075_v16 = vunpack.i.l.bf16 %v3074_v14 }
 0x62e   : > { %3078 = vrot.lane.b32.xlu0 %v3077_v12, %s3746_s13 }
 0x62f   : > { %v1362_v20 = vsel %vm1246_vm9, %v3075_v16, %v3076_v15 }
 0x632   : > { %1344 = vperm.xlu0 %3050, %v1340_v13  }
 0x699   : > { %v1361_v24 = vpop.permute.xlu1 %1360 }
 0x6a0   : > { %v3079_v17 = vpop.permute.xlu0 %3078 }
 0x6a1   : > { %v3081_v18 = vunpack.i.h.bf16 %v3079_v17  ;;  %v3080_v19 = vunpack.i.l.bf16 %v3079_v17 }
 0x6a3   : > { %v1363_v21 = vsel %vm1246_vm9, %v3080_v19, %v3081_v18  ;;  %v1475_v19 = vld [vmem:[#allocation19 + $0x8] sm:$0xff] }
 0x6a4   : > { %v2803_v22 = vpack.c.bf16 %v1363_v21, %v1362_v20 }
 0x6a6   : > { %2804 = vmatprep.subr.bf16.mxu1 %v2803_v22 }
 0x6a7   : > { %2806 = vmatpush3.bf16.msra.mxu1 %v2803_v22 }
 0x6a8   : > { %2719 = vmatprep.subr.mxu1 %v1361_v24 }
 0x6aa   : > { %v1350_v28 = vpop.permute.xlu1 %1349 }
 0x6ab   : > { %2720 = vmatpush3.msra.mxu1 %v1361_v24 }
 0x6ac   : > { %2722 = vmatmul.mubr.msk.f32.vlgmr.msra.gmra.mrb[2].mxu1 %vm1163_vm10, %v1339_v25  ;;  %2739 = vmatprep.subr.mxu1 %v1327_v2 }
 0x6ad   : > { %2740 = vmatpush3.msra.mxu1 %v1327_v2  ;;  %2741 = vmatprep.mubr.msk.f32.mxu1 %vm1617_vm12, %v1603_v26  ;;  %v1477_v2 = vld [vmem:[#allocation21 + $0x8] sm:$0xff] }
 0x6ae   : > { %2819 = vmatprep.subr.bf16.mxu1 %v3740_v7 }
 0x6b0   : > { %2742 = vmatmul.mubr.msk.f32.vlgmr.msra.gmra.mrb[4].mxu1 %vm1617_vm12, %v1604_v27 }
 0x6b1   : > { %2756 = vmatprep.mubr.msk.f32.mxu1 %vm3741_vm4, %v3737_v0  ;;  %v1345_v30 = vpop.permute.xlu0 %1344 }
 0x77f   : > { %v2723_v29 = vpop.f32.mrb[2].mxu1 }
 0x780   : > { %v1445_v31 = vadd.f32 %v2723_v29, %v1350_v28  ;;  %v1439_v32 = vpop.f32.mrb[3].mxu1 }
 0x781   : > { %v1440_v33 = vadd.f32 %v1439_v32, %v1345_v30 }
 0x782   : > { %v1449_v34 = vmax.f32 %v1445_v31, 0.0 }
 0x783   : > { %v1448_v35 = vmax.f32 %v1440_v33, 0.0  ;;  %v2743_v58 = vpop.f32.mrb[4].mxu1 }
 0x784   : > { %1451 = vst.msk [vmem:[#allocation3 + $0x18] sm:$0xff] %vm1004_vm0, %v1449_v34  ;;  %v1690_v61 = vpop.f32.mrb[5].mxu1 }
 0x785   : > { %1450 = vst.msk [vmem:[#allocation3 + $0x8] sm:$0xff] %vm1004_vm0, %v1448_v35 }
 0x78b   : > { %v1455_v36 = vld [vmem:[#allocation3 + $0x18] sm:$0xff] }
 0x78c   : > { %v3087_v37 = vpack.i.bf16 %v1455_v36, %v3737_v0  ;;  %v1453_v38 = vld [vmem:[#allocation3 + $0x8] sm:$0xff] }
 0x78d   : > { %v3082_v39 = vpack.i.bf16 %v1453_v38, %v3737_v0  ;;  %v3092_v40 = vpack.i.bf16 %v1455_v36, %v1453_v38 }
 0x78e   : > { %3088 = vrot.lane.b32.xlu1 %v3087_v37, %s3739_s0 }
 0x78f   : > { %3083 = vrot.lane.b32.xlu0 %v3082_v39, %s3739_s0 }
 0x792   : > { %3103 = vrot.lane.b32.xlu1 %v3082_v39, %s3746_s13 }
 0x793   : > { %3093 = vrot.lane.b32.xlu0 %v3092_v40, %s3745_s24 }
 0x797   : > { %3098 = vrot.lane.b32.xlu0 %v3087_v37, %s3746_s13 }
 0x800   : > { %v3089_v41 = vpop.permute.xlu1 %3088 }
 0x801   : > { %v3091_v42 = vunpack.i.h.bf16 %v3089_v41  ;;  %v3090_v43 = vunpack.i.l.bf16 %v3089_v41  ;;  %v3084_v44 = vpop.permute.xlu0 %3083 }
 0x802   : > { %v3086_v45 = vunpack.i.h.bf16 %v3084_v44  ;;  %v3085_v46 = vunpack.i.l.bf16 %v3084_v44 }
 0x803   : > { %v1469_v47 = vsel %vm1334_vm11, %v3090_v43, %v3091_v42 }
 0x804   : > { %v3112_v48 = vpack.i.bf16 %v3091_v42, %v1469_v47  ;;  %v1468_v49 = vsel %vm1334_vm11, %v3085_v46, %v3086_v45  ;;  %v3104_v52 = vpop.permute.xlu1 %3103 }
 0x805   : > { %v3107_v51 = vpack.i.bf16 %v3086_v45, %v1468_v49  ;;  %v3094_v53 = vpop.permute.xlu0 %3093  ;;  %v3106_v55 = vunpack.i.h.bf16 %v3104_v52  ;;  %v3105_v56 = vunpack.i.l.bf16 %v3104_v52 }
 0x806   : > { %3113 = vrot.lane.b32.xlu0 %v3112_v48, %s3746_s13 }
 0x807   : > { %3108 = vrot.lane.b32.xlu1 %v3107_v51, %s3746_s13  ;;  %v1508_v63 = vsel %vm1246_vm9, %v3105_v56, %v3106_v55 }
 0x809   : > { %v3099_v57 = vpop.permute.xlu0 %3098 }
 0x80a   : > { %v3101_v59 = vunpack.i.h.bf16 %v3099_v57  ;;  %v3100_v60 = vunpack.i.l.bf16 %v3099_v57  ;;  %1480 = vperm.xlu0 %3050, %v1476_v54   ;;  %v1730_v54 = vld [vmem:[#allocation24] sm:$0xff] }
 0x80b   : > { %3118 = vrot.lane.b32.xlu1 %v3094_v53, %s3746_s13 }
 0x80c   : > { %v1509_v1 = vsel %vm1246_vm9, %v3100_v60, %v3101_v59 }
 0x80d   : > { %v2807_v3 = vpack.c.bf16 %v1509_v1, %v1508_v63 }
 0x80e   : > { %1609 = vperm.xlu0 %3050, %v1605_v62  }
 0x80f   : > { %2808 = vmatprep.subr.bf16.mxu0 %v2807_v3  ;;  %1485 = vperm.xlu1 %3066, %v1477_v2  }
 0x810   : > { %2810 = vmatpush3.bf16.msra.mxu0 %v2807_v3 }
 0x813   : > { %1614 = vperm.xlu1 %3066, %v1606_v4  }
 0x878   : > { %v3114_v5 = vpop.permute.xlu0 %3113 }
 0x879   : > { %v3116_v6 = vunpack.i.h.bf16 %v3114_v5  ;;  %v3115_v8 = vunpack.i.l.bf16 %v3114_v5  ;;  %v3109_v9 = vpop.permute.xlu1 %3108 }
 0x87a   : > { %v3111_v10 = vunpack.i.h.bf16 %v3109_v9  ;;  %v3110_v11 = vunpack.i.l.bf16 %v3109_v9 }
 0x87b   : > { %v1511_v12 = vsel %vm1246_vm9, %v3115_v8, %v3116_v6 }
 0x87c   : > { %v1510_v13 = vsel %vm1246_vm9, %v3110_v11, %v3111_v10 }
 0x87d   : > { %v3119_v14 = vpop.permute.xlu1 %3118  ;;  %v2811_v15 = vpack.c.bf16 %v1511_v12, %v1510_v13 }
 0x87e   : > { %v3121_v16 = vunpack.i.h.bf16 %v3119_v14  ;;  %v3120_v17 = vunpack.i.l.bf16 %v3119_v14  ;;  %v1729_v14 = vld [vmem:[#allocation22] sm:$0xff] }
 0x87f   : > { %2812 = vmatprep.subr.bf16.mxu0 %v2811_v15 }
 0x880   : > { %v2815_v18 = vpack.c.bf16 %v3121_v16, %v3120_v17  ;;  %2814 = vmatpush3.bf16.msra.mxu0 %v2811_v15 }
 0x882   : > { %2816 = vmatprep.subr.bf16.mxu0 %v2815_v18 }
 0x884   : > { %2818 = vmatpush3.bf16.msra.mxu0 %v2815_v18 }
 0x885   : > { %2828 = vmatprep.subr.bf16.mxu0 %v3740_v7 }
 0x887   : > { %2737 = vmatmul.mubr.msk.f32.vlgmr.msra.gmra.mrb[4].mxu0 %vm1518_vm13, %v1475_v19 }
 0x888   : > { %2765 = vmatprep.mubr.msk.f32.mxu0 %vm3741_vm4, %v3737_v0 }
 0x889   : > { %v1481_v21 = vpop.permute.xlu0 %1480 }
 0x88d   : > { %v1610_v25 = vpop.permute.xlu0 %1609 }
 0x88e   : > { %v1486_v20 = vpop.permute.xlu1 %1485  ;;  %v1691_v31 = vadd.f32 %v1690_v61, %v1610_v25  ;;  %v1951_v25 = vld [vmem:[%s4755_s30] sm:$0xff]  ;;  %s4758_s30 = sld [smem:[#allocation55_spill]] }
 0x892   : > { %v1615_v22 = vpop.permute.xlu1 %1614 }
 0x893   : > { %v1696_v29 = vadd.f32 %v2743_v58, %v1615_v22 }
 0x95a   : > { %v2738_v24 = vpop.f32.mrb[4].mxu0 }
 0x95b   : > { %v1597_v26 = vadd.f32 %v2738_v24, %v1486_v20  ;;  %v1591_v27 = vpop.f32.mrb[5].mxu0 }
 0x95c   : > { %v1592_v28 = vadd.f32 %v1591_v27, %v1481_v21 }
 0x95d   : > { %v1601_v30 = vmax.f32 %v1597_v26, 0.0 }
 0x95e   : > { %v1600_v32 = vmax.f32 %v1592_v28, 0.0 }
 0x95f   : > { %v1700_v33 = vadd.f32 %v1696_v29, %v1601_v30  ;;  %v1853_v30 = vld [vmem:[%s4756_s6] sm:$0xff]  ;;  %s4759_s6 = sld [smem:[#allocation59_spill]] }
 0x960   : > { %v1699_v34 = vadd.f32 %v1691_v31, %v1600_v32 }
 0x961   : > { %v1702_v35 = vmax.f32 %v1700_v33, 0.0 }
 0x962   : > { %v1701_v36 = vmax.f32 %v1699_v34, 0.0 }
 0x963   : > { %1704 = vst.msk [vmem:[%s1002_s18 + $0x8] sm:$0xff] %vm1004_vm0, %v1702_v35  ;;  %1706 = vst.msk [vmem:[#allocation2 + $0x18] sm:$0xff] %vm1004_vm0, %v1702_v35 }
 0x964   : > { %1703 = vst.msk [vmem:[%s1002_s18] sm:$0xff] %vm1004_vm0, %v1701_v36  ;;  %1705 = vst.msk [vmem:[#allocation2 + $0x8] sm:$0xff] %vm1004_vm0, %v1701_v36  ;;  %s4757_s18 = sld [smem:[#allocation53_spill]] }
 0x96a   : > { %v4478_v37 = vld [vmem:[#allocation2 + $0x18] sm:$0xff] }
 0x96b   : > { %v3127_v38 = vpack.i.bf16 %v4478_v37, %v3737_v0  ;;  %v4482_v39 = vld [vmem:[#allocation2 + $0x8] sm:$0xff] }
 0x96c   : > { %v3122_v40 = vpack.i.bf16 %v4482_v39, %v3737_v0  ;;  %v3132_v41 = vpack.i.bf16 %v4478_v37, %v4482_v39 }
 0x96d   : > { %3128 = vrot.lane.b32.xlu1 %v3127_v38, %s3738_s14 }
 0x96e   : > { %3123 = vrot.lane.b32.xlu0 %v3122_v40, %s3738_s14 }
 0x971   : > { %3143 = vrot.lane.b32.xlu1 %v3122_v40, %s3743_s22 }
 0x972   : > { %3133 = vrot.lane.b32.xlu0 %v3132_v41, %s3739_s0 }
 0x976   : > { %3138 = vrot.lane.b32.xlu0 %v3127_v38, %s3743_s22 }
 0x9df   : > { %v3129_v42 = vpop.permute.xlu1 %3128 }
 0x9e0   : > { %v3131_v43 = vunpack.i.h.bf16 %v3129_v42  ;;  %v3130_v44 = vunpack.i.l.bf16 %v3129_v42  ;;  %v3124_v45 = vpop.permute.xlu0 %3123  ;;  %v1852_v42 = vld [vmem:[#allocation25] sm:$0xff] }
 0x9e1   : > { %v3126_v46 = vunpack.i.h.bf16 %v3124_v45  ;;  %v3125_v47 = vunpack.i.l.bf16 %v3124_v45  ;;  %v1950_v45 = vld [vmem:[%s4757_s18] sm:$0xff]  ;;  %s2336_s18 = scalar_lea.sflag [#allocation6], %s4329_s16 }
 0x9e2   : > { %v1724_v48 = vsel %vm1025_vm2, %v3130_v44, %v3131_v43  ;;  %v2832_v44 = vpack.c.bf16 %v4478_v37, %v4482_v39 }
 0x9e3   : > { %v3152_v49 = vpack.i.bf16 %v3131_v43, %v1724_v48  ;;  %v1723_v50 = vsel %vm1025_vm2, %v3125_v47, %v3126_v46  ;;  %v3144_v52 = vpop.permute.xlu1 %3143 }
 0x9e4   : > { %v3147_v51 = vpack.i.bf16 %v3126_v46, %v1723_v50  ;;  %v3134_v53 = vpop.permute.xlu0 %3133  ;;  %v3146_v55 = vunpack.i.h.bf16 %v3144_v52  ;;  %v3145_v56 = vunpack.i.l.bf16 %v3144_v52 }
 0x9e5   : > { %3153 = vrot.lane.b32.xlu0 %v3152_v49, %s3743_s22 }
 0x9e6   : > { %3148 = vrot.lane.b32.xlu1 %v3147_v51, %s3743_s22  ;;  %v1756_v60 = vsel %vm1049_vm5, %v3145_v56, %v3146_v55 }
 0x9e8   : > { %v3139_v57 = vpop.permute.xlu0 %3138 }
 0x9e9   : > { %v3141_v58 = vunpack.i.h.bf16 %v3139_v57  ;;  %v3140_v59 = vunpack.i.l.bf16 %v3139_v57  ;;  %1733 = vperm.xlu0 %3050, %v1730_v54  }
 0x9ea   : > { %3158 = vrot.lane.b32.xlu1 %v3134_v53, %s3743_s22 }
 0x9eb   : > { %v1757_v61 = vsel %vm1049_vm5, %v3140_v59, %v3141_v58 }
 0x9ec   : > { %v2820_v62 = vpack.c.bf16 %v1757_v61, %v1756_v60 }
 0x9ee   : > { %2821 = vmatpush3.bf16.msra.mxu1 %v2820_v62  ;;  %v2045_v62 = vld [vmem:[%s4758_s30] sm:$0xf]  ;;  %s4762_s30 = sld [smem:[#allocation58_spill]] }
 0x9ef   : > { %2822 = vmatprep.subr.bf16.mxu1 %v3740_v7 }
 0x9f4   : > { %v2252_v23 = vld [vmem:[%s4762_s30] sm:$0xf] }
 0xa57   : > { %v3154_v63 = vpop.permute.xlu0 %3153 }
 0xa58   : > { %v3156_v1 = vunpack.i.h.bf16 %v3154_v63  ;;  %v3155_v2 = vunpack.i.l.bf16 %v3154_v63  ;;  %v3149_v3 = vpop.permute.xlu1 %3148 }
 0xa59   : > { %v3151_v4 = vunpack.i.h.bf16 %v3149_v3  ;;  %v3150_v5 = vunpack.i.l.bf16 %v3149_v3 }
 0xa5a   : > { %v1759_v6 = vsel %vm1049_vm5, %v3155_v2, %v3156_v1 }
 0xa5b   : > { %v1758_v8 = vsel %vm1049_vm5, %v3150_v5, %v3151_v4 }
 0xa5c   : > { %v2823_v9 = vpack.c.bf16 %v1759_v6, %v1758_v8  ;;  %v3159_v10 = vpop.permute.xlu1 %3158 }
 0xa5d   : > { %v3161_v11 = vunpack.i.h.bf16 %v3159_v10  ;;  %v3160_v12 = vunpack.i.l.bf16 %v3159_v10  ;;  %v2044_v10 = vld [vmem:[#allocation27] sm:$0xf] }
 0xa5e   : > { %2824 = vmatpush3.bf16.msra.mxu1 %v2823_v9 }
 0xa5f   : > { %v2826_v13 = vpack.c.bf16 %v3161_v11, %v3160_v12  ;;  %2825 = vmatprep.subr.bf16.mxu1 %v3740_v7 }
 0xa62   : > { %2827 = vmatpush3.bf16.msra.mxu1 %v2826_v13 }
 0xa63   : > { %2834 = vmatprep.subr.bf16.mxu1 %v3740_v7 }
 0xa65   : > { %2757 = vmatmul.mubr.msk.f32.vlgmr.msra.gmra.mrb[6].mxu1 %vm1518_vm13, %v1729_v14 }
 0xa66   : > { %2781 = vmatprep.mubr.msk.f32.mxu1 %vm3741_vm4, %v3737_v0 }
 0xa68   : > { %v1734_v15 = vpop.permute.xlu0 %1733 }
 0xb38   : > { %v1835_v16 = vpop.f32.mrb[6].mxu1 }
 0xb39   : > { %v1836_v17 = vadd.f32 %v1835_v16, %v1734_v15  ;;  %v2758_v18 = vpop.f32.mrb[7].mxu1 }
 0xb3b   : > { %v1839_v19 = vmax.f32 %v1836_v17, 0.0  ;;  %v2141_v17 = vld [vmem:[#allocation3] sm:$0xf] }
 0xb3c   : > { %v2145_v18 = vrot.slane %v2141_v17, 4 }
 0xb3d   : > { %1840 = vst.msk [vmem:[#allocation3 + $0x8] sm:$0xff] %vm1004_vm0, %v1839_v19 }
 0xb44   : > { %v1842_v20 = vld [vmem:[#allocation3 + $0x8] sm:$0xff] }
 0xb45   : > { %1850 = vrot.lane.b32.xlu0 %v1842_v20, %s3739_s0  ;;  %v3162_v21 = vpack.i.bf16 %v1842_v20, %v3737_v0 }
 0xb47   : > { %3163 = vrot.lane.b32.xlu1 %v3162_v21, %s3738_s14  ;;  %s990_s14 = scalar_lea.vmem [#allocation28], %s2605_s1  ;;  %s3628_s1 = sshll.u32 %s3747_s29, 4  ;;  %s3629_s1 = int_to_ptr.vmem [resolvable:$false] %s3628_s1 }
 0xb4b   : > { %3168 = vrot.lane.b32.xlu1 %v3162_v21, %s3743_s22 }
 0xbb7   : > { %v1851_v22 = vpop.permute.xlu0 %1850 }
 0xbb8   : > { %1867 = vrot.lane.b32.xlu1 %v1851_v22, %s3743_s22 }
 0xbb9   : > { %v3164_v24 = vpop.permute.xlu1 %3163 }
 0xbba   : > { %v3166_v26 = vunpack.i.h.bf16 %v3164_v24  ;;  %v3165_v27 = vunpack.i.l.bf16 %v3164_v24  ;;  %v2253_v24 = vld [vmem:[%s4759_s6] sm:$0xf]  ;;  %s2354_s6 = sshll.u32 %s990_s14, 4  ;;  %s4594_s6 = int_to_ptr.vmem [resolvable:$true] %s2354_s6 }
 0xbbb   : > { %p3631_p7 = scmp.lt.s32.totalorder %s4594_s6, %s3629_s1 }
 0xbbc   : > { %v1849_v28 = vsel %vm1025_vm2, %v3165_v27, %v3166_v26  ;;  %1954 = vperm.xlu1 %3066, %v1951_v25  }
 0xbbd   : > { %v3172_v29 = vpack.i.bf16 %v3166_v26, %v1849_v28  ;;  %v3169_v31 = vpop.permute.xlu1 %3168 }
 0xbbe   : > { %v3171_v32 = vunpack.i.h.bf16 %v3169_v31  ;;  %v3170_v33 = vunpack.i.l.bf16 %v3169_v31 }
 0xbbf   : > { %3173 = vrot.lane.b32.xlu0 %v3172_v29, %s3743_s22  ;;  %s4760_s22 = sld [smem:[#allocation57_spill]] }
 0xbc0   : > { %v1869_v38 = vsel %vm1049_vm5, %v3170_v33, %v3171_v32 }
 0xbc3   : > { %1856 = vperm.xlu0 %3050, %v1853_v30  }
 0xbc5   : > { %v2159_v32 = vld [vmem:[%s4760_s22] sm:$0xf]  ;;  %s4763_s22 = sld [smem:[#allocation60_spill]] }
 0xbcb   : > { %s4592_s17 = scalar_lea.hbm %s4763_s22, %s2642_s10 }
 0xc2a   : > { %v1868_v43 = vpop.permute.xlu1 %1867 }
 0xc31   : > { %v3174_v34 = vpop.permute.xlu0 %3173 }
 0xc32   : > { %v3176_v35 = vunpack.i.h.bf16 %v3174_v34  ;;  %v3175_v36 = vunpack.i.l.bf16 %v3174_v34 }
 0xc34   : > { %v1870_v40 = vsel %vm1049_vm5, %v3175_v36, %v3176_v35 }
 0xc35   : > { %v2829_v41 = vpack.c.bf16 %v1870_v40, %v1869_v38 }
 0xc37   : > { %2830 = vmatpush3.bf16.msra.mxu0 %v2829_v41  ;;  %v2158_v41 = vld [vmem:[%s4761_s4] sm:$0xf]  ;;  %s3624_s4 = scalar_lea.vmem %s4594_s6, 64 }
 0xc38   : > { %2763 = vmatprep.subr.mxu0 %v3737_v0  ;;  %p3625_p4 = scmp.ne.s32.totalorder %s4594_s6, %s3624_s4 }
 0xc3a   : > { %p3626_p8 = pnand %p3625_p4, %p4764_p11 }
 0xc3b   : > { %2764 = vmatpush3.msra.mxu0 %v1868_v43  ;;  %v1955_v48 = vpop.permute.xlu1 %1954 }
 0xc3c   : > { %2766 = vmatmul.mubr.msk.f32.vlgmr.msra.gmra.mrb[6].mxu0 %vm1163_vm10, %v1852_v42  ;;  %2831 = vmatprep.subr.bf16.mxu0 %v3740_v7  ;;  %p3627_p5 = pneg %p3626_p8 }
 0xc3d   : > { %2833 = vmatpush3.bf16.msra.mxu0 %v2832_v44  ;;  %2772 = vmatprep.mubr.msk.f32.mxu0 %vm3741_vm4, %v3737_v0 }
 0xc3e   : > { %2837 = vmatprep.subr.bf16.mxu0 %v3740_v7 }
 0xc40   : > { %2773 = vmatmul.mubr.msk.f32.vlgmr.msra.gmra.mrb[8].mxu0 %vm1004_vm0, %v1950_v45 }
 0xc41   : > { %2788 = vmatprep.mubr.msk.f32.mxu0 %vm3741_vm4, %v3737_v0 }
 0xc42   : > { %v1857_v37 = vpop.permute.xlu0 %1856 }
 0xd0f   : > { %v1943_v39 = vpop.f32.mrb[6].mxu0 }
 0xd10   : > { %v1944_v46 = vadd.f32 %v1943_v39, %v1857_v37  ;;  %v2767_v47 = vpop.f32.mrb[7].mxu0 }
 0xd12   : > { %v1947_v50 = vmax.f32 %v1944_v46, 0.0 }
 0xd13   : > { %v2026_v49 = vpop.f32.mrb[8].mxu0 }
 0xd14   : > { %v2027_v51 = vadd.f32 %v2026_v49, %v1955_v48  ;;  %v2774_v52 = vpop.f32.mrb[9].mxu0 }
 0xd16   : > { %v2030_v53 = vadd.f32 %v2027_v51, %v1947_v50 }
 0xd18   : > { %v2031_v54 = vmax.f32 %v2030_v53, 0.0 }
 0xd1a   : > { %2032 = vst.msk [vmem:[#allocation2 + $0x8] sm:$0xff] %vm1004_vm0, %v2031_v54 }
 0xd21   : > { %v4539_v55 = vld [vmem:[#allocation2 + $0x8] sm:$0xff] }
 0xd22   : > { %2042 = vrot.lane.b32.xlu1 %v4539_v55, %s3745_s24  ;;  %v3177_v7 = vpack.i.bf16 %v4539_v55, %v3737_v0 }
 0xd24   : > { %3178 = vrot.lane.b32.xlu0 %v3177_v7, %s3739_s0 }
 0xd28   : > { %3183 = vrot.lane.b32.xlu0 %v3177_v7, %s3746_s13 }
 0xd94   : > { %v2043_v56 = vpop.permute.xlu1 %2042 }
 0xd95   : > { %2059 = vrot.lane.b32.xlu0 %v2043_v56, %s3746_s13 }
 0xd96   : > { %v3179_v57 = vpop.permute.xlu0 %3178 }
 0xd97   : > { %v3181_v58 = vunpack.i.h.bf16 %v3179_v57  ;;  %v3180_v59 = vunpack.i.l.bf16 %v3179_v57 }
 0xd99   : > { %v2041_v60 = vsel %vm1334_vm11, %v3180_v59, %v3181_v58 }
 0xd9a   : > { %v3187_v61 = vpack.i.bf16 %v3181_v58, %v2041_v60  ;;  %v3184_v63 = vpop.permute.xlu0 %3183 }
 0xd9b   : > { %v3186_v1 = vunpack.i.h.bf16 %v3184_v63  ;;  %v3185_v2 = vunpack.i.l.bf16 %v3184_v63 }
 0xd9c   : > { %3188 = vrot.lane.b32.xlu1 %v3187_v61, %s3746_s13 }
 0xd9d   : > { %v2061_v6 = vsel %vm1246_vm9, %v3185_v2, %v3186_v1 }
 0xda0   : > { %2048 = vperm.xlu1 %3066, %v2045_v62  }
 0xe07   : > { %v2060_v11 = vpop.permute.xlu0 %2059 }
 0xe0e   : > { %v3189_v3 = vpop.permute.xlu1 %3188 }
 0xe0f   : > { %v3191_v4 = vunpack.i.h.bf16 %v3189_v3  ;;  %v3190_v5 = vunpack.i.l.bf16 %v3189_v3 }
 0xe11   : > { %v2062_v8 = vsel %vm1246_vm9, %v3190_v5, %v3191_v4 }
 0xe12   : > { %v2835_v9 = vpack.c.bf16 %v2062_v8, %v2061_v6 }
 0xe14   : > { %2836 = vmatpush3.bf16.msra.mxu1 %v2835_v9 }
 0xe15   : > { %2779 = vmatprep.subr.mxu1 %v3737_v0 }
 0xe18   : > { %2780 = vmatpush3.msra.mxu1 %v2060_v11 }
 0xe19   : > { %2782 = vmatmul.mubr.msk.f32.vlgmr.msra.gmra.mrb[8].mxu1 %vm1163_vm10, %v2044_v10 }
 0xe1f   : > { %v2049_v12 = vpop.permute.xlu1 %2048 }
 0xeec   : > { %v2135_v13 = vpop.f32.mrb[8].mxu1 }
 0xeed   : > { %v2136_v14 = vadd.f32 %v2135_v13, %v2049_v12  ;;  %v2783_v15 = vpop.f32.mrb[9].mxu1 }
 0xeef   : > { %v2139_v16 = vmax.f32 %v2136_v14, 0.0 }
 0xef1   : > { %2140 = vst.msk [vmem:[#allocation3 + $0x8] sm:$0xf] %vm1013_vm1, %v2139_v16 }
 0xef8   : > { %v2142_v19 = vld [vmem:[#allocation3 + $0x8] sm:$0xf] }
 0xef9   : > { %2154 = vrot.lane.b32.xlu1 %v2142_v19, %s3745_s24  ;;  %v2146_v20 = vrot.slane %v2142_v19, 4 }
 0xefb   : > { %v3192_v21 = vpack.i.bf16 %v2146_v20, %v2145_v18 }
 0xefd   : > { %3193 = vrot.lane.b32.xlu0 %v3192_v21, %s3739_s0 }
 0xf6b   : > { %v2155_v22 = vpop.permute.xlu1 %2154 }
 0xf6c   : > { %2171 = vrot.lane.b32.xlu1 %v2155_v22, %s3746_s13 }
 0xf6f   : > { %v3194_v25 = vpop.permute.xlu0 %3193 }
 0xf70   : > { %v3196_v26 = vunpack.i.h.bf16 %v3194_v25  ;;  %v3195_v27 = vunpack.i.l.bf16 %v3194_v25  ;;  %2256 = vperm.xlu1 %3066, %v2253_v24  }
 0xf72   : > { %v2151_v28 = vsel %vm1334_vm11, %v3195_v27, %v3196_v26  ;;  %v2157_v29 = vsel %vm1031_vm3, %v2142_v19, %v3196_v26 }
 0xf73   : > { %v2156_v30 = vsel %vm1031_vm3, %v2141_v17, %v2151_v28 }
 0xf74   : > { %v3197_v31 = vpack.i.bf16 %v2157_v29, %v2156_v30 }
 0xf76   : > { %3198 = vrot.lane.b32.xlu0 %v3197_v31, %s3746_s13  ;;  %s3630_s13 = scalar_lea.vmem %s3629_s1, 128 }
 0xf77   : > { %p3632_p6 = scmp.lt.s32.totalorder %s3630_s13, %s3624_s4 }
 0xf79   : > { %p3633_p9 = por %p3632_p6, %p3631_p7 }
 0xf7a   : > { %2162 = vperm.xlu0 %3050, %v2159_v32  }
 0xf7b   : > { %p3634_p12 = pnand %p3633_p9, %p3627_p5 }
 0xfde   : > { %v2172_v36 = vpop.permute.xlu1 %2171 }
 0xfe8   : > { %v3199_v33 = vpop.permute.xlu0 %3198 }
 0xfe9   : > { %v3201_v34 = vunpack.i.h.bf16 %v3199_v33  ;;  %v3200_v35 = vunpack.i.l.bf16 %v3199_v33 }
 0xfeb   : > { %v2173_v38 = vsel %vm1246_vm9, %v3200_v35, %v3201_v34 }
 0xfec   : > { %v2838_v40 = vpack.c.bf16 %v2172_v36, %v2173_v38 }
 0xfee   : > { %2840 = vmatpush3.bf16.msk.msra.mxu0 %vm4393_vm7, %v2838_v40 }
 0xfef   : > { %2791 = vmatprep.subr.mxu0 %v3737_v0  ;;  %v2257_v37 = vpop.permute.xlu1 %2256 }
 0xff1   : > { %2789 = vmatmul.mubr.msk.f32.vlgmr.msra.gmra.mrb[10].mxu0 %vm1052_vm8, %v2158_v41 }
 0xff2   : > { %2792 = vmatpush3.msra.mxu0 %v4539_v55  ;;  %2793 = vmatprep.mubr.msk.f32.mxu0 %vm3741_vm4, %v3737_v0 }
 0xff5   : > { %2794 = vmatmul.mubr.msk.f32.vlgmr.msra.gmra.mrb[12].mxu0 %vm1617_vm12, %v2252_v23 }
 0xff9   : > { %v2163_v42 = vpop.permute.xlu0 %2162 }
0x10c4   : > { %v2246_v43 = vpop.f32.mrb[10].mxu0 }
0x10c5   : > { %v2247_v44 = vadd.f32 %v2246_v43, %v2163_v42  ;;  %v2790_v45 = vpop.f32.mrb[11].mxu0 }
0x10c7   : > { %v2250_v46 = vmax.f32 %v2247_v44, 0.0 }
0x10c8   : > { %v2328_v39 = vpop.f32.mrb[12].mxu0 }
0x10c9   : > { %v2329_v47 = vadd.f32 %v2328_v39, %v2257_v37  ;;  %v2795_v48 = vpop.f32.mrb[13].mxu0 }
0x10cb   : > { %v2332_v0 = vadd.f32 %v2329_v47, %v2250_v46 }
0x10cd   : > { %v2333_v49 = vmax.f32 %v2332_v0, 0.0 }
0x10cf   : > { %2334 = vst.msk [vmem:[%s990_s14] sm:$0xf] %vm1013_vm1, %v2333_v49 }
0x10d0   : > { %3637 = shalt.err (!%p3634_p12)
}
0x10d1   : > { %s3638_s16 = scalar_lea.hbm %s4592_s17, 64  ;;  %s3642_s10 = scalar_lea.hbm %s4763_s22, 128 }
0x10d2   : > { %p3639_p1 = scmp.ne.s32.totalorder %s4592_s17, %s3638_s16  ;;  %p3643_p2 = scmp.lt.u32.totalorder %s4592_s17, %s4763_s22 }
0x10d3   : > { %p3644_p3 = scmp.lt.u32.totalorder %s3642_s10, %s3638_s16  ;;  %p3646_p4 = scmp.lt.u32.totalorder %s3638_s16, %s4592_s17 }
0x10d4   : > { %p3640_p13 = pnand %p3639_p1, %p4764_p11 }
0x10d5   : > { %p3645_p10 = por %p3644_p3, %p3643_p2 }
0x10d6   : > { %p3641_p0 = pneg %p3640_p13 }
0x10d7   : > { %p3647_p8 = por %p3646_p4, %p3645_p10 }
0x10d9   : > { %p3648_p5 = pnand %p3647_p8, %p3641_p0 }
0x10db   : > { %3651 = shalt.err (!%p3648_p5)
}
0x10dc   : > { %2899 = dma.vmem_to_hbm [thread:$0]  (%p4764_p11), %s4594_s6, 64, %s4592_s17, %s2336_s18  }
0x10dd PF: > { %s2369_s24 = sand.u32 1, %s3706_s27   ;;  %p4765_p7 = scmp.ne.s32.totalorder %s4735_s5, 0 }
0x10de   : > { %p4766_p6 = scmp.ge.s32.totalorder %s3718_s28, 2  ;;  %s2370_s4 = scalar_lea.sflag [#allocation6], %s2369_s24 }
0x10e0   : > { %p2949_p9 = pnand %p4766_p6, %p4765_p7 }
0x10e2   : > { %3701 = dma.done.wait (!%p2949_p9), %s2370_s4, 64  }
0x10e3   : > { %3703 = vsyncadd (!%p2949_p9), %s2370_s4, 4294967232  ;;  %p47_p12 = scmp.ge.s32.totalorder %s4253_s2, 4   ;;  %s4767_s27 = smov %s3710_s3 }
0x10e4   : > { %s4768_s3 = smov %s3714_s7  ;;  %s4769_s7 = smov %s4264_s9 }
0x10e5   : > { %s4770_s28 = smov %s4253_s2  ;;  %49 = sbr.rel (!%p47_p12) target bundleno = 36 (0x24), region = 233 }
0x10ec   :  { %2383 = vsyncpa [#allocation5], 1 }
0x10ed   :  { %2385 = vsyncpa [#allocation5 + $0x1], 1 }
0x10ee   :  { %2386 = vsyncpa [#allocation8], 1 }
0x10ef   :  { %2387 = vsyncpa [#allocation11], 1 }
0x10f0   :  { %2388 = vsyncpa [#allocation14], 1 }
0x10f1   :  { %2389 = vsyncpa [#allocation17], 1 }
0x10f2   :  { %2390 = vsyncpa [#allocation20], 1 }
0x10f3   :  { %2391 = vsyncpa [#allocation23], 1 }
0x10f4   :  { %2392 = vsyncpa [#allocation26], 1 }
0x10f5   :  { %2393 = vsyncpa [#allocation6], 1 }
0x10f6   :  { %2395 = vsyncpa [#allocation6 + $0x1], 1 }

</bundles_post_ra>
